<compile_context>
chip_gen: v5e
topology: v5e:2x2
jax: 0.10.0
libtpu: 0.0.40
codegen_flags: <defaults>
</compile_context>

<pallas_src>
import functools

import jax
import jax.numpy as jnp
from jax.experimental import pallas as pl
from jax.experimental.pallas import tpu as pltpu


def _transition_kernel(h_ref, qm_ref, qcf_ref, u_ref, w_ref, b_ref,
                       uexp_ref, pbu_ref, erep_ref, etile_ref,
                       srow_ref, scol_ref,
                       vec_ref, covf_ref, *, dz, du, symmetric_cov):
    f32 = jnp.float32
    h = h_ref[...]            # (Bt, dz)
    qm = qm_ref[...]          # (Bt, dz)
    qcf = qcf_ref[...]        # (Bt, dz*dz)  flat covariance, lane-dense
    u = u_ref[...]            # (Bt, du)
    off = dz * du

    # One fused, lane-dense matmul for fc_B / trans / fc_o.
    fused = jnp.dot(h, w_ref[...], preferred_element_type=f32) + b_ref[...]
    Bflat = fused[:, :off]                       # (Bt, dz*du)  lane-aligned slab
    v = fused[:, off:off + dz]                   # (Bt, dz)
    r = fused[:, off + dz:off + 2 * dz]          # (Bt, dz)
    o = fused[:, off + 2 * dz:off + 3 * dz]      # (Bt, dz)

    # Bu[b, i] = sum_j Bflat[b, i*du + j] * u[b, j]
    #   lane-replicate u on the MXU (u @ U_expand), multiply, group-sum with P.
    u_tiled = jnp.dot(u, uexp_ref[...], preferred_element_type=f32)     # (Bt, dz*du)
    Bu = jnp.dot(Bflat * u_tiled, pbu_ref[...], preferred_element_type=f32)  # (Bt, dz)

    # A = I + v r^T  =>  A @ x = x + v * (r . x)   (rank-1 matvec)
    common = Bu + o
    d = qm + v * jnp.sum(r * qm, axis=1, keepdims=True) + common
    sample = h + v * jnp.sum(r * h, axis=1, keepdims=True) + common

    # Rank-1 covariance propagation in the FLAT layout (m = i*dz + j):
    #   cov[m] = Q[m] + v[i]*(r^T Q)[j] + w[i]*v[j],  w = Qr + (r^T Q r) v
    # Qr[b,i]  = sum_j Q[b,i,j] r[b,j]  = ((qcf * (r @ E_tile)) @ S_row)[b,i]
    # rTQ[b,j] = sum_i r[b,i] Q[b,i,j]  = ((qcf * (r @ E_rep )) @ S_col)[b,j]
    r_tile = jnp.dot(r, etile_ref[...], preferred_element_type=f32)     # r[j] at lane m
    Qr = jnp.dot(qcf * r_tile, srow_ref[...], preferred_element_type=f32)
    if symmetric_cov:
        # Q symmetric (MultivariateNormal covariance) => r^T Q == (Q r)^T.
        rTQ = Qr
    else:
        r_rep = jnp.dot(r, erep_ref[...], preferred_element_type=f32)   # r[i] at lane m
        rTQ = jnp.dot(qcf * r_rep, scol_ref[...], preferred_element_type=f32)
    rQr = jnp.sum(rTQ * r, axis=1, keepdims=True)                        # (Bt, 1)
    w = Qr + rQr * v                                                     # (Bt, dz)

    cov_flat = (qcf
                + jnp.dot(v, erep_ref[...], preferred_element_type=f32)
                * jnp.dot(rTQ, etile_ref[...], preferred_element_type=f32)
                + jnp.dot(w, erep_ref[...], preferred_element_type=f32)
                * jnp.dot(v, etile_ref[...], preferred_element_type=f32))

    # Two slice stores (no concat copy); lane-dense store for the big cov slab.
    vec_ref[:, :dz] = sample.astype(vec_ref.dtype)
    vec_ref[:, dz:] = d.astype(vec_ref.dtype)
    covf_ref[...] = cov_flat.astype(covf_ref.dtype)


def transition_forward(h, q_mean, q_cov, u, params, *, b_tile=None,
                       symmetric_cov=True):
    """Pallas wrapper. Returns (sample, d, z_next_cov); (d, z_next_cov) are the
    parameters of the MultivariateNormal in the PyTorch reference.
    symmetric_cov=True assumes q_cov is symmetric (always true for a
    MultivariateNormal covariance); set False for arbitrary Q."""
    B, dz = h.shape
    du = u.shape[1]
    f32 = jnp.float32
    n_out = dz * du + 3 * dz

    # Glue: fuse weights -> (in, out) = (dz, dz*du + 2*dz + dz); fuse biases.
    W_fused = jnp.concatenate(
        [params["W_B"], params["W_trans"], params["W_o"]], axis=0).T.astype(f32)
    b_fused = jnp.concatenate(
        [params["b_B"], params["b_trans"], params["b_o"]])[None, :].astype(f32)

    # 0/1 expansion / group-sum matrices (built once, VMEM-resident):
    eye_z = jnp.eye(dz, dtype=f32)
    eye_u = jnp.eye(du, dtype=f32)
    E_rep = jnp.repeat(eye_z, dz, axis=1)      # (dz, dz*dz): x@E_rep -> x[m//dz]
    E_tile = jnp.tile(eye_z, (1, dz))          # (dz, dz*dz): x@E_tile -> x[m%dz]
    S_row = E_rep.T                            # (dz*dz, dz): group-sum over j
    S_col = E_tile.T                           # (dz*dz, dz): group-sum over i
    U_expand = jnp.tile(eye_u, (1, dz))        # (du, dz*du): u@U_expand -> u[m%du]
    P_bu = jnp.repeat(eye_z, du, axis=0)       # (dz*du, dz): group-sum over du lanes

    # Flatten covariance to a lane-dense 2-D layout at the boundary (free).
    qcf = q_cov.reshape(B, dz * dz).astype(f32)

    # Batch tiling: largest block that keeps the (double-buffered) flat cov
    # streams + temporaries comfortably inside VMEM on v5e/v6e/v7x.
    if b_tile is None:
        b_tile = B if B <= 512 else 512
    grid = (pl.cdiv(B, b_tile),)

    kernel = functools.partial(_transition_kernel, dz=dz, du=du,
                               symmetric_cov=symmetric_cov)

    vec, covf = pl.pallas_call(
        kernel,
        out_shape=(
            jax.ShapeDtypeStruct((B, 2 * dz), f32),        # [sample | d]
            jax.ShapeDtypeStruct((B, dz * dz), f32),       # flat z_next_cov
        ),
        grid=grid,
        in_specs=[
            pl.BlockSpec((b_tile, dz), lambda i: (i, 0)),           # h
            pl.BlockSpec((b_tile, dz), lambda i: (i, 0)),           # q_mean
            pl.BlockSpec((b_tile, dz * dz), lambda i: (i, 0)),      # q_cov (flat)
            pl.BlockSpec((b_tile, du), lambda i: (i, 0)),           # u
            pl.BlockSpec((dz, n_out), lambda i: (0, 0)),            # fused W (resident)
            pl.BlockSpec((1, n_out), lambda i: (0, 0)),             # fused bias
            pl.BlockSpec((du, dz * du), lambda i: (0, 0)),          # U_expand
            pl.BlockSpec((dz * du, dz), lambda i: (0, 0)),          # P_bu
            pl.BlockSpec((dz, dz * dz), lambda i: (0, 0)),          # E_rep
            pl.BlockSpec((dz, dz * dz), lambda i: (0, 0)),          # E_tile
            pl.BlockSpec((dz * dz, dz), lambda i: (0, 0)),          # S_row
            pl.BlockSpec((dz * dz, dz), lambda i: (0, 0)),          # S_col
        ],
        out_specs=(
            pl.BlockSpec((b_tile, 2 * dz), lambda i: (i, 0)),
            pl.BlockSpec((b_tile, dz * dz), lambda i: (i, 0)),
        ),
        compiler_params=pltpu.CompilerParams(
            dimension_semantics=("parallel",),          # v7x: shard batch over 2 TCs
            vmem_limit_bytes=64 * 1024 * 1024),         # above default scoped limit
    )(h.astype(f32), q_mean.astype(f32), qcf, u.astype(f32),
      W_fused, b_fused, U_expand, P_bu, E_rep, E_tile, S_row, S_col)

    sample, d = vec[:, :dz], vec[:, dz:]
    cov = covf.reshape(B, dz, dz)
    return sample, d, cov


def transition_ref(h, q_mean, q_cov, u, params):
    """Plain-JAX reference mirroring the PyTorch forward exactly."""
    B, dz = h.shape
    vr = h @ params["W_trans"].T + params["b_trans"]
    v, r = vr[:, :dz], vr[:, dz:]
    I = jnp.eye(dz, dtype=h.dtype)[None]
    A = I + v[:, :, None] * r[:, None, :]
    Bmat = (h @ params["W_B"].T + params["b_B"]).reshape(B, dz, -1)
    o = h @ params["W_o"].T + params["b_o"]
    Bu = jnp.einsum('bij,bj->bi', Bmat, u)
    d = jnp.einsum('bij,bj->bi', A, q_mean) + Bu + o
    sample = jnp.einsum('bij,bj->bi', A, h) + Bu + o
    cov = jnp.einsum('bij,bjk,blk->bil', A, q_cov, A)
    return sample, d, cov


if __name__ == "__main__":
    dim_z, dim_u = 32, 8
    key = jax.random.PRNGKey(0)
    ks = jax.random.split(key, 12)

    def linear_init(kw, kb, out_f, in_f):
        bound = 1.0 / jnp.sqrt(in_f)
        W = jax.random.uniform(kw, (out_f, in_f), jnp.float32, -bound, bound)
        b = jax.random.uniform(kb, (out_f,), jnp.float32, -bound, bound)
        return W, b

    W_trans, b_trans = linear_init(ks[0], ks[1], 2 * dim_z, dim_z)   # trans ~ Linear(dz, 2dz)
    W_B, b_B = linear_init(ks[2], ks[3], dim_z * dim_u, dim_z)       # fc_B
    W_o, b_o = linear_init(ks[4], ks[5], dim_z, dim_z)               # fc_o
    params = dict(W_trans=W_trans, b_trans=b_trans, W_B=W_B, b_B=b_B,
                  W_o=W_o, b_o=b_o)

    ok = True
    # B=16 (even blocks) and B=12 (exercises the padded last block).
    for B in (16, 12):
        kb = jax.random.fold_in(key, B)
        k6, k7, k8, k9 = jax.random.split(kb, 4)
        h = jax.random.normal(k6, (B, dim_z), jnp.float32)
        u = jax.random.normal(k7, (B, dim_u), jnp.float32)
        q_mean = jax.random.normal(k8, (B, dim_z), jnp.float32)
        L = 0.1 * jax.random.normal(k9, (B, dim_z, dim_z), jnp.float32)
        q_cov = jnp.einsum('bik,bjk->bij', L, L) + 1e-2 * jnp.eye(dim_z)[None]  # SPD

        sample_r, d_r, cov_r = transition_ref(h, q_mean, q_cov, u, params)

        # b_tile=8 exercises the multi-block batch grid path even at small B.
        for sym in (True, False):
            sample, d, cov = jax.block_until_ready(
                transition_forward(h, q_mean, q_cov, u, params,
                                   b_tile=8, symmetric_cov=sym))
            ok &= bool(jnp.allclose(sample, sample_r, atol=1e-4, rtol=1e-4))
            ok &= bool(jnp.allclose(d, d_r, atol=1e-4, rtol=1e-4))
            ok &= bool(jnp.allclose(cov, cov_r, atol=1e-4, rtol=1e-4))

    assert ok
    print("KERNEL_OK")
</pallas_src>

<mosaic_0001>
module attributes {stable_mosaic.version = 11 : i64} {
  func.func @_transition_kernel(%arg0: i32, %arg1: memref<8x32xf32, #tpu.memory_space<vmem>>, %arg2: memref<8x32xf32, #tpu.memory_space<vmem>>, %arg3: memref<8x1024xf32, #tpu.memory_space<vmem>>, %arg4: memref<8x8xf32, #tpu.memory_space<vmem>>, %arg5: memref<32x352xf32, #tpu.memory_space<vmem>>, %arg6: memref<1x352xf32, #tpu.memory_space<vmem>>, %arg7: memref<8x256xf32, #tpu.memory_space<vmem>>, %arg8: memref<256x32xf32, #tpu.memory_space<vmem>>, %arg9: memref<32x1024xf32, #tpu.memory_space<vmem>>, %arg10: memref<32x1024xf32, #tpu.memory_space<vmem>>, %arg11: memref<1024x32xf32, #tpu.memory_space<vmem>>, %arg12: memref<1024x32xf32, #tpu.memory_space<vmem>>, %arg13: memref<8x64xf32, #tpu.memory_space<vmem>>, %arg14: memref<8x1024xf32, #tpu.memory_space<vmem>>) attributes {dimension_semantics = [#tpu.dimension_semantics<parallel>], iteration_bounds = array<i64: 2>, scalar_prefetch = 0 : i64, scratch_operands = 0 : i64, tpu.core_type = #tpu.core_type<tc>, window_params = [{transform_indices = @transform_0, window_bounds = array<i64: 8, 32>}, {transform_indices = @transform_1, window_bounds = array<i64: 8, 32>}, {transform_indices = @transform_2, window_bounds = array<i64: 8, 1024>}, {transform_indices = @transform_3, window_bounds = array<i64: 8, 8>}, {pipeline_mode = #tpu.pipeline_mode<synchronous>, transform_indices = @transform_4, window_bounds = array<i64: 32, 352>}, {pipeline_mode = #tpu.pipeline_mode<synchronous>, transform_indices = @transform_5, window_bounds = array<i64: 1, 352>}, {pipeline_mode = #tpu.pipeline_mode<synchronous>, transform_indices = @transform_6, window_bounds = array<i64: 8, 256>}, {pipeline_mode = #tpu.pipeline_mode<synchronous>, transform_indices = @transform_7, window_bounds = array<i64: 256, 32>}, {pipeline_mode = #tpu.pipeline_mode<synchronous>, transform_indices = @transform_8, window_bounds = array<i64: 32, 1024>}, {pipeline_mode = #tpu.pipeline_mode<synchronous>, transform_indices = @transform_9, window_bounds = array<i64: 32, 1024>}, {pipeline_mode = #tpu.pipeline_mode<synchronous>, transform_indices = @transform_10, window_bounds = array<i64: 1024, 32>}, {pipeline_mode = #tpu.pipeline_mode<synchronous>, transform_indices = @transform_11, window_bounds = array<i64: 1024, 32>}, {transform_indices = @transform_12, window_bounds = array<i64: 8, 64>}, {transform_indices = @transform_13, window_bounds = array<i64: 8, 1024>}]} {
    %c0 = arith.constant 0 : index
    %c0_0 = arith.constant 0 : index
    %0 = vector.load %arg1[%c0, %c0_0] : memref<8x32xf32, #tpu.memory_space<vmem>>, vector<8x32xf32>
    %c0_1 = arith.constant 0 : index
    %c0_2 = arith.constant 0 : index
    %1 = vector.load %arg2[%c0_1, %c0_2] : memref<8x32xf32, #tpu.memory_space<vmem>>, vector<8x32xf32>
    %c0_3 = arith.constant 0 : index
    %c0_4 = arith.constant 0 : index
    %2 = vector.load %arg3[%c0_3, %c0_4] : memref<8x1024xf32, #tpu.memory_space<vmem>>, vector<8x1024xf32>
    %c0_5 = arith.constant 0 : index
    %c0_6 = arith.constant 0 : index
    %3 = vector.load %arg4[%c0_5, %c0_6] : memref<8x8xf32, #tpu.memory_space<vmem>>, vector<8x8xf32>
    %c0_7 = arith.constant 0 : index
    %c0_8 = arith.constant 0 : index
    %4 = vector.load %arg5[%c0_7, %c0_8] : memref<32x352xf32, #tpu.memory_space<vmem>>, vector<32x352xf32>
    %cst = arith.constant dense<0.000000e+00> : vector<8x352xf32>
    %5 = tpu.matmul %0, %4, %cst {dimension_numbers = #tpu.dot_dimension_numbers<[1], [0], [0], [1], [0, 0, 1, 1], [], []>} : vector<8x32xf32>, vector<32x352xf32>, vector<8x352xf32> -> vector<8x352xf32>
    %c0_9 = arith.constant 0 : index
    %c0_10 = arith.constant 0 : index
    %6 = vector.load %arg6[%c0_9, %c0_10] : memref<1x352xf32, #tpu.memory_space<vmem>>, vector<1x352xf32>
    %7 = vector.broadcast %6 : vector<1x352xf32> to vector<8x352xf32>
    %8 = arith.addf %5, %7 : vector<8x352xf32>
    %9 = vector.extract_strided_slice %8 {offsets = [0, 0], sizes = [8, 256], strides = [1, 1]} : vector<8x352xf32> to vector<8x256xf32>
    %10 = vector.extract_strided_slice %8 {offsets = [0, 256], sizes = [8, 32], strides = [1, 1]} : vector<8x352xf32> to vector<8x32xf32>
    %11 = vector.extract_strided_slice %8 {offsets = [0, 288], sizes = [8, 32], strides = [1, 1]} : vector<8x352xf32> to vector<8x32xf32>
    %12 = vector.extract_strided_slice %8 {offsets = [0, 320], sizes = [8, 32], strides = [1, 1]} : vector<8x352xf32> to vector<8x32xf32>
    %c0_11 = arith.constant 0 : index
    %c0_12 = arith.constant 0 : index
    %13 = vector.load %arg7[%c0_11, %c0_12] : memref<8x256xf32, #tpu.memory_space<vmem>>, vector<8x256xf32>
    %cst_13 = arith.constant dense<0.000000e+00> : vector<8x256xf32>
    %14 = tpu.matmul %3, %13, %cst_13 {dimension_numbers = #tpu.dot_dimension_numbers<[1], [0], [0], [1], [0, 0, 1, 1], [], []>} : vector<8x8xf32>, vector<8x256xf32>, vector<8x256xf32> -> vector<8x256xf32>
    %15 = arith.mulf %9, %14 : vector<8x256xf32>
    %c0_14 = arith.constant 0 : index
    %c0_15 = arith.constant 0 : index
    %16 = vector.load %arg8[%c0_14, %c0_15] : memref<256x32xf32, #tpu.memory_space<vmem>>, vector<256x32xf32>
    %cst_16 = arith.constant dense<0.000000e+00> : vector<8x32xf32>
    %17 = tpu.matmul %15, %16, %cst_16 {dimension_numbers = #tpu.dot_dimension_numbers<[1], [0], [0], [1], [0, 0, 1, 1], [], []>} : vector<8x256xf32>, vector<256x32xf32>, vector<8x32xf32> -> vector<8x32xf32>
    %18 = arith.addf %17, %12 : vector<8x32xf32>
    %19 = arith.mulf %11, %1 : vector<8x32xf32>
    %cst_17 = arith.constant dense<0.000000e+00> : vector<8xf32>
    %20 = vector.multi_reduction <add>, %19, %cst_17 [1] : vector<8x32xf32> to vector<8xf32>
    %21 = vector.shape_cast %20 : vector<8xf32> to vector<8x1xf32>
    %22 = vector.broadcast %21 : vector<8x1xf32> to vector<8x32xf32>
    %23 = arith.mulf %10, %22 : vector<8x32xf32>
    %24 = arith.addf %1, %23 : vector<8x32xf32>
    %25 = arith.addf %24, %18 : vector<8x32xf32>
    %26 = arith.mulf %11, %0 : vector<8x32xf32>
    %cst_18 = arith.constant dense<0.000000e+00> : vector<8xf32>
    %27 = vector.multi_reduction <add>, %26, %cst_18 [1] : vector<8x32xf32> to vector<8xf32>
    %28 = vector.shape_cast %27 : vector<8xf32> to vector<8x1xf32>
    %29 = vector.broadcast %28 : vector<8x1xf32> to vector<8x32xf32>
    %30 = arith.mulf %10, %29 : vector<8x32xf32>
    %31 = arith.addf %0, %30 : vector<8x32xf32>
    %32 = arith.addf %31, %18 : vector<8x32xf32>
    %c0_19 = arith.constant 0 : index
    %c0_20 = arith.constant 0 : index
    %33 = vector.load %arg10[%c0_19, %c0_20] : memref<32x1024xf32, #tpu.memory_space<vmem>>, vector<32x1024xf32>
    %cst_21 = arith.constant dense<0.000000e+00> : vector<8x1024xf32>
    %34 = tpu.matmul %11, %33, %cst_21 {dimension_numbers = #tpu.dot_dimension_numbers<[1], [0], [0], [1], [0, 0, 1, 1], [], []>} : vector<8x32xf32>, vector<32x1024xf32>, vector<8x1024xf32> -> vector<8x1024xf32>
    %35 = arith.mulf %2, %34 : vector<8x1024xf32>
    %c0_22 = arith.constant 0 : index
    %c0_23 = arith.constant 0 : index
    %36 = vector.load %arg11[%c0_22, %c0_23] : memref<1024x32xf32, #tpu.memory_space<vmem>>, vector<1024x32xf32>
    %cst_24 = arith.constant dense<0.000000e+00> : vector<8x32xf32>
    %37 = tpu.matmul %35, %36, %cst_24 {dimension_numbers = #tpu.dot_dimension_numbers<[1], [0], [0], [1], [0, 0, 1, 1], [], []>} : vector<8x1024xf32>, vector<1024x32xf32>, vector<8x32xf32> -> vector<8x32xf32>
    %38 = arith.mulf %37, %11 : vector<8x32xf32>
    %cst_25 = arith.constant dense<0.000000e+00> : vector<8xf32>
    %39 = vector.multi_reduction <add>, %38, %cst_25 [1] : vector<8x32xf32> to vector<8xf32>
    %40 = vector.shape_cast %39 : vector<8xf32> to vector<8x1xf32>
    %41 = vector.broadcast %40 : vector<8x1xf32> to vector<8x32xf32>
    %42 = arith.mulf %41, %10 : vector<8x32xf32>
    %43 = arith.addf %37, %42 : vector<8x32xf32>
    %c0_26 = arith.constant 0 : index
    %c0_27 = arith.constant 0 : index
    %44 = vector.load %arg9[%c0_26, %c0_27] : memref<32x1024xf32, #tpu.memory_space<vmem>>, vector<32x1024xf32>
    %cst_28 = arith.constant dense<0.000000e+00> : vector<8x1024xf32>
    %45 = tpu.matmul %10, %44, %cst_28 {dimension_numbers = #tpu.dot_dimension_numbers<[1], [0], [0], [1], [0, 0, 1, 1], [], []>} : vector<8x32xf32>, vector<32x1024xf32>, vector<8x1024xf32> -> vector<8x1024xf32>
    %c0_29 = arith.constant 0 : index
    %c0_30 = arith.constant 0 : index
    %46 = vector.load %arg10[%c0_29, %c0_30] : memref<32x1024xf32, #tpu.memory_space<vmem>>, vector<32x1024xf32>
    %cst_31 = arith.constant dense<0.000000e+00> : vector<8x1024xf32>
    %47 = tpu.matmul %37, %46, %cst_31 {dimension_numbers = #tpu.dot_dimension_numbers<[1], [0], [0], [1], [0, 0, 1, 1], [], []>} : vector<8x32xf32>, vector<32x1024xf32>, vector<8x1024xf32> -> vector<8x1024xf32>
    %48 = arith.mulf %45, %47 : vector<8x1024xf32>
    %49 = arith.addf %2, %48 : vector<8x1024xf32>
    %c0_32 = arith.constant 0 : index
    %c0_33 = arith.constant 0 : index
    %50 = vector.load %arg9[%c0_32, %c0_33] : memref<32x1024xf32, #tpu.memory_space<vmem>>, vector<32x1024xf32>
    %cst_34 = arith.constant dense<0.000000e+00> : vector<8x1024xf32>
    %51 = tpu.matmul %43, %50, %cst_34 {dimension_numbers = #tpu.dot_dimension_numbers<[1], [0], [0], [1], [0, 0, 1, 1], [], []>} : vector<8x32xf32>, vector<32x1024xf32>, vector<8x1024xf32> -> vector<8x1024xf32>
    %c0_35 = arith.constant 0 : index
    %c0_36 = arith.constant 0 : index
    %52 = vector.load %arg10[%c0_35, %c0_36] : memref<32x1024xf32, #tpu.memory_space<vmem>>, vector<32x1024xf32>
    %cst_37 = arith.constant dense<0.000000e+00> : vector<8x1024xf32>
    %53 = tpu.matmul %10, %52, %cst_37 {dimension_numbers = #tpu.dot_dimension_numbers<[1], [0], [0], [1], [0, 0, 1, 1], [], []>} : vector<8x32xf32>, vector<32x1024xf32>, vector<8x1024xf32> -> vector<8x1024xf32>
    %54 = arith.mulf %51, %53 : vector<8x1024xf32>
    %55 = arith.addf %49, %54 : vector<8x1024xf32>
    %c0_38 = arith.constant 0 : index
    %c0_39 = arith.constant 0 : index
    %56 = vector.load %arg13[%c0_38, %c0_39] : memref<8x64xf32, #tpu.memory_space<vmem>>, vector<8x32xf32>
    tpu.vector_store %arg13[%c0_38, %c0_39], %32 {strides = array<i32>} : memref<8x64xf32, #tpu.memory_space<vmem>>, vector<8x32xf32>,
    %c0_40 = arith.constant 0 : index
    %c32 = arith.constant 32 : index
    %57 = vector.load %arg13[%c0_40, %c32] : memref<8x64xf32, #tpu.memory_space<vmem>>, vector<8x32xf32>
    tpu.vector_store %arg13[%c0_40, %c32], %25 {strides = array<i32>} : memref<8x64xf32, #tpu.memory_space<vmem>>, vector<8x32xf32>,
    %c0_41 = arith.constant 0 : index
    %c0_42 = arith.constant 0 : index
    %58 = vector.load %arg14[%c0_41, %c0_42] : memref<8x1024xf32, #tpu.memory_space<vmem>>, vector<8x1024xf32>
    tpu.vector_store %arg14[%c0_41, %c0_42], %55 {strides = array<i32>} : memref<8x1024xf32, #tpu.memory_space<vmem>>, vector<8x1024xf32>,
    return
  }
  func.func @transform_0(%arg0: i32) -> (i32, i32) {
    %c0_i32 = arith.constant 0 : i32
    %c0_i32_0 = arith.constant 0 : i32
    return %arg0, %c0_i32 : i32, i32
  }
  func.func @transform_1(%arg0: i32) -> (i32, i32) {
    %c0_i32 = arith.constant 0 : i32
    %c0_i32_0 = arith.constant 0 : i32
    return %arg0, %c0_i32 : i32, i32
  }
  func.func @transform_2(%arg0: i32) -> (i32, i32) {
    %c0_i32 = arith.constant 0 : i32
    %c0_i32_0 = arith.constant 0 : i32
    return %arg0, %c0_i32 : i32, i32
  }
  func.func @transform_3(%arg0: i32) -> (i32, i32) {
    %c0_i32 = arith.constant 0 : i32
    %c0_i32_0 = arith.constant 0 : i32
    return %arg0, %c0_i32 : i32, i32
  }
  func.func @transform_4(%arg0: i32) -> (i32, i32) {
    %c0_i32 = arith.constant 0 : i32
    %c0_i32_0 = arith.constant 0 : i32
    %c0_i32_1 = arith.constant 0 : i32
    return %c0_i32, %c0_i32_0 : i32, i32
  }
  func.func @transform_5(%arg0: i32) -> (i32, i32) {
    %c0_i32 = arith.constant 0 : i32
    %c0_i32_0 = arith.constant 0 : i32
    %c0_i32_1 = arith.constant 0 : i32
    return %c0_i32, %c0_i32_0 : i32, i32
  }
  func.func @transform_6(%arg0: i32) -> (i32, i32) {
    %c0_i32 = arith.constant 0 : i32
    %c0_i32_0 = arith.constant 0 : i32
    %c0_i32_1 = arith.constant 0 : i32
    return %c0_i32, %c0_i32_0 : i32, i32
  }
  func.func @transform_7(%arg0: i32) -> (i32, i32) {
    %c0_i32 = arith.constant 0 : i32
    %c0_i32_0 = arith.constant 0 : i32
    %c0_i32_1 = arith.constant 0 : i32
    return %c0_i32, %c0_i32_0 : i32, i32
  }
  func.func @transform_8(%arg0: i32) -> (i32, i32) {
    %c0_i32 = arith.constant 0 : i32
    %c0_i32_0 = arith.constant 0 : i32
    %c0_i32_1 = arith.constant 0 : i32
    return %c0_i32, %c0_i32_0 : i32, i32
  }
  func.func @transform_9(%arg0: i32) -> (i32, i32) {
    %c0_i32 = arith.constant 0 : i32
    %c0_i32_0 = arith.constant 0 : i32
    %c0_i32_1 = arith.constant 0 : i32
    return %c0_i32, %c0_i32_0 : i32, i32
  }
  func.func @transform_10(%arg0: i32) -> (i32, i32) {
    %c0_i32 = arith.constant 0 : i32
    %c0_i32_0 = arith.constant 0 : i32
    %c0_i32_1 = arith.constant 0 : i32
    return %c0_i32, %c0_i32_0 : i32, i32
  }
  func.func @transform_11(%arg0: i32) -> (i32, i32) {
    %c0_i32 = arith.constant 0 : i32
    %c0_i32_0 = arith.constant 0 : i32
    %c0_i32_1 = arith.constant 0 : i32
    return %c0_i32, %c0_i32_0 : i32, i32
  }
  func.func @transform_12(%arg0: i32) -> (i32, i32) {
    %c0_i32 = arith.constant 0 : i32
    %c0_i32_0 = arith.constant 0 : i32
    return %arg0, %c0_i32 : i32, i32
  }
  func.func @transform_13(%arg0: i32) -> (i32, i32) {
    %c0_i32 = arith.constant 0 : i32
    %c0_i32_0 = arith.constant 0 : i32
    return %arg0, %c0_i32 : i32, i32
  }
}

</mosaic_0001>

<bundles_post_ra>
// kernel: tpu_custom_call.1
= control target key start
LH: loop header
LB: loop body
LE: loop exit
PB: predicated region body
PF: predicated region fallthrough
CT: control target
= control target key end

     0   :  { %s3789_s0 = inlined_call_operand.vmem [shape: f32[16,32], index: 0, kind: input, shape index: {}]   ;;  %s3790_s1 = inlined_call_operand.vmem [shape: f32[16,32], index: 1, kind: input, shape index: {}]   ;;  %s3791_s2 = inlined_call_operand.vmem [shape: f32[16,1024], index: 2, kind: input, shape index: {}]   ;;  %s3792_s3 = inlined_call_operand.vmem [shape: f32[16,8], index: 3, kind: input, shape index: {}]   ;;  %s3793_s4 = inlined_call_operand.vmem [shape: f32[32,352], index: 4, kind: input, shape index: {}]   ;;  %s3794_s5 = inlined_call_operand.vmem [shape: f32[1,352], index: 5, kind: input, shape index: {}]   ;;  %s3795_s6 = inlined_call_operand.vmem [shape: f32[8,256], index: 6, kind: input, shape index: {}]   ;;  %s3796_s7 = inlined_call_operand.vmem [shape: f32[256,32], index: 7, kind: input, shape index: {}]   ;;  %s3797_s8 = inlined_call_operand.vmem [shape: f32[32,1024], index: 8, kind: input, shape index: {}]   ;;  %s3798_s9 = inlined_call_operand.vmem [shape: f32[32,1024], index: 9, kind: input, shape index: {}]   ;;  %s3799_s10 = inlined_call_operand.vmem [shape: f32[1024,32], index: 10, kind: input, shape index: {}]   ;;  %s3800_s11 = inlined_call_operand.vmem [shape: f32[1024,32], index: 11, kind: input, shape index: {}]   ;;  %s3801_s12 = inlined_call_operand.hbm [shape: f32[16,64], index: 12, kind: output, shape index: {0}]   ;;  %s3802_s13 = inlined_call_operand.hbm [shape: f32[16,1024], index: 13, kind: output, shape index: {1}]  }
   0x1   :  { %3818 = sst [smem:[#allocation22_spill]] %s3789_s0 }
   0x2   :  { %3819 = sst [smem:[#allocation23_spill]] %s3790_s1 }
   0x3   :  { %3820 = sst [smem:[#allocation24_spill]] %s3795_s6 }
   0x4   :  { %19 = vsyncpa [#allocation3], 0 }
   0x5   :  { %21 = vsyncpa [#allocation3 + $0x1], 0 }
   0x6   :  { %22 = vsyncpa [#allocation5], 0 }
   0x7   :  { %24 = vsyncpa [#allocation5 + $0x1], 0  ;;  %s2449_s25 = smov 0   ;;  %s2451_s26 = smov 0  }
   0x8   :  { %s2453_s27 = smov 0   ;;  %s2455_s28 = smov 0  }
   0x9 LB: > { %3821 = sst [smem:[#allocation8_spill]] %s2370_s27  ;;  %s2470_s11 = sadd.s32 4294967295, %s2374_s28   ;;  %s2374_s28 = sphi %s2455_s28, %s3852_s28   ;;  %s2370_s27 = sphi %s2453_s27, %s3854_s27   ;;  %s2366_s26 = sphi %s2451_s26, %s3856_s26   ;;  %s2362_s25 = sphi %s2449_s25, %s3855_s25  }
   0xa   : > { %s2139_s29 = sadd.s32 4294967294, %s2374_s28   ;;  %s2474_s30 = sadd.s32 1, %s2374_s28  }
   0xb   : > { %3822 = sst [smem:[#allocation9_spill]] %s2474_s30  ;;  %s309_s14 = sadd.s32 1, %s2370_s27 }
   0xc   : > { %s306_s15 = ssub.s32 %s2374_s28, %s2474_s30  ;;  %p319_p0 = scmp.ne.s32.totalorder %s2370_s27, %s2366_s26 }
   0xd   : > { %p307_p1 = scmp.eq.s32.totalorder %s306_s15, 0  ;;  %p320_p2 = scmp.eq.s32.totalorder %s2470_s11, 1 }
   0xe   : > { %p325_p3 = scmp.ne.s32.totalorder %s2366_s26, %s2362_s25  ;;  %p326_p4 = scmp.eq.s32.totalorder %s2139_s29, 1 }
   0xf   : > { %s2485_s16 = scalar_select %p307_p1, %s2370_s27, %s309_s14  }
  0x10   : > { %p2487_p5 = por %p320_p2, %p319_p0  ;;  %p2491_p6 = por %p326_p4, %p325_p3 }
  0x11   : > { %3823 = sst [smem:[#allocation10_spill]] %s2485_s16  ;;  %p2142_p7 = scmp.ge.s32.totalorder %s2374_s28, 1 }
  0x12   : > { %s3825_s18 = scalar_select %p2491_p6, 1, 0 }
  0x13   : > { %p423_p8 = scmp.lt.s32.totalorder %s2374_s28, 3 }
  0x14   : > { %3826 = sst [smem:[#allocation11_spill]] %s3825_s18 }
  0x15   : > { %p424_p9 = pnand %p2142_p7, %p423_p8 }
  0x17   : > { %427 = sbr.rel (%p424_p9) target bundleno = 868 (0x364), region = 68 }
  0x1c   : > { %v523_v0 = vld [vmem:[%s3793_s4 + $0x58] sm:$0xff]  ;;  %v520_v1 = vld [vmem:[%s3793_s4 + $0x40] sm:$0xff]  ;;  %v521_v2 = vld [vmem:[%s3793_s4 + $0x48] sm:$0xff]  ;;  %p484_p10 = scmp.lt.s32.totalorder %s2470_s11, 1  ;;  %s3827_s6 = sld [smem:[#allocation24_spill]]  ;;  %vm598_vm0 = vcmask 64512  }
  0x1d   : > { %588 = vmatpush.msra.mxu2 %v523_v0  ;;  %548 = vmatpush.msra.mxu0 %v521_v2  ;;  %v518_v3 = vld [vmem:[%s3793_s4 + $0x30] sm:$0xff]  ;;  %v517_v5 = vld [vmem:[%s3793_s4 + $0x28] sm:$0xff]  ;;  %v515_v6 = vld [vmem:[%s3793_s4 + $0x18] sm:$0xff]  ;;  %vm532_vm1 = vcmask 261120   ;;  %s3828_s0 = sld [smem:[#allocation22_spill]]  ;;  %s2378_s14 = smov 64  }
  0x1e   : > { %s2517_s21 = scalar_select %p484_p10, %s2470_s11, 1  ;;  %v522_v7 = vld [vmem:[%s3793_s4 + $0x50] sm:$0xff]  ;;  %v519_v8 = vld [vmem:[%s3793_s4 + $0x38] sm:$0xff]  ;;  %v512_v11 = vld [vmem:[%s3793_s4] sm:$0xff]  ;;  %vm1965_vm2 = vcmask 523520  }
  0x1f   : > { %589 = vmatpush.msra.mxu2 %v520_v1  ;;  %549 = vmatpush.msra.mxu0 %v518_v3  ;;  %v514_v10 = vld [vmem:[%s3793_s4 + $0x10] sm:$0xff]  ;;  %v516_v13 = vld [vmem:[%s3793_s4 + $0x20] sm:$0xff]  ;;  %s3829_s1 = sld [smem:[#allocation23_spill]]  ;;  %v659_v16 = vld [vmem:[%s3796_s7 + $0x78] sm:$0xff]  ;;  %s3148_s24 = sand.u32 1, %s2366_s26  }
  0x20   : > { %s2145_s22 = sshll.u32 %s2517_s21, 3  ;;  %568 = vmatpush.msra.mxu1 %v522_v7  ;;  %v513_v17 = vld [vmem:[%s3793_s4 + $0x8] sm:$0xff]  ;;  %v658_v18 = vld [vmem:[%s3796_s7 + $0x70] sm:$0xff]  ;;  %v675_v19 = vld [vmem:[%s3796_s7 + $0xf8] sm:$0xff]  ;;  %s2143_s18 = sshll.u32 %s3148_s24, 3 }
  0x21   : > { %590 = vmatpush.msra.mxu2 %v517_v5  ;;  %s500_s29 = scalar_lea.vmem %s3792_s3, %s2145_s22  ;;  %550 = vmatpush.msra.mxu0 %v515_v6  ;;  %v657_v20 = vld [vmem:[%s3796_s7 + $0x68] sm:$0xff]  ;;  %v674_v21 = vld [vmem:[%s3796_s7 + $0xf0] sm:$0xff]  ;;  %v656_v22 = vld [vmem:[%s3796_s7 + $0x60] sm:$0xff]  ;;  %s2202_s20 = sshll.u32 %s2517_s21, 6 }
  0x22   : > { %v596_v4 = vld [vmem:[%s3827_s6] sm:$0xff]  ;;  %v597_v9 = vld [vmem:[%s3827_s6 + $0x8] sm:$0xff]  ;;  %569 = vmatpush.msra.mxu1 %v519_v8  ;;  %v655_v24 = vld [vmem:[%s3796_s7 + $0x58] sm:$0xff]  ;;  %s2377_s6 = smov 96   ;;  %s3287_s16 = scalar_lea.vmem %s3791_s2, %s2202_s20 }
  0x23   : > { %617 = vmatpush.msra.mxu3 %v596_v4  ;;  %v511_v12 = vld [vmem:[%s500_s29] sm:$0xff]  ;;  %s487_s27 = scalar_lea.vmem %s3828_s0, %s2145_s22  ;;  %591 = vmatpush.msra.mxu2 %v514_v10  ;;  %v673_v23 = vld [vmem:[%s3796_s7 + $0xe8] sm:$0xff]  ;;  %v654_v26 = vld [vmem:[%s3796_s7 + $0x50] sm:$0xff]  ;;  %s2197_s15 = sshll.u32 %s2470_s11, 3 }
  0x24   : > { %2153 = vmatmul.msk.f32.vlgmr.msra.gmra.mxu3 %vm598_vm0, %v511_v12  ;;  %v2553_v14 = vld [vmem:[%s487_s27] sm:$0xff]  ;;  %551 = vmatpush.msra.mxu0 %v512_v11  ;;  %v671_v27 = vld [vmem:[%s3796_s7 + $0xd8] sm:$0xff]  ;;  %v653_v28 = vld [vmem:[%s3796_s7 + $0x48] sm:$0xff]  ;;  %s3843_s27 = smov 32   ;;  %s1976_s29 = scalar_lea.sflag [#allocation3], %s3148_s24 }
  0x25   : > { %637 = vmatpush.msrb.mxu3 %v597_v9  ;;  %s2550_s23 = scalar_lea.vmem %s3829_s1, %s2145_s22  ;;  %2152 = vmatmul.msk.f32.vlgmr.msra.gmra.mxu2 %vm532_vm1, %v2553_v14  ;;  %s3807_s22 = smov 32   ;;  %v672_v25 = vld [vmem:[%s3796_s7 + $0xe0] sm:$0xff]  ;;  %v670_v29 = vld [vmem:[%s3796_s7 + $0xd0] sm:$0xff]  ;;  %v669_v31 = vld [vmem:[%s3796_s7 + $0xc8] sm:$0xff] }
  0x26   : > { %v502_v15 = vld [vmem:[%s2550_s23] sm:$0xff]  ;;  %2150 = vmatmul.msk.f32.vlgmr.msra.gmra.mxu0 %vm532_vm1, %v2553_v14  ;;  %570 = vmatpush.msra.mxu1 %v516_v13  ;;  %v651_v32 = vld [vmem:[%s3796_s7 + $0x38] sm:$0xff]  ;;  %v650_v34 = vld [vmem:[%s3796_s7 + $0x30] sm:$0xff]  ;;  %s2300_s30 = scalar_lea.hbm %s3801_s12, 16 }
  0x27   : > { %721 = vrot.lane.b32.xlu1 %v502_v15, %s3807_s22  ;;  %680 = vmatpush.msrb.mxu0 %v659_v16  ;;  %v652_v30 = vld [vmem:[%s3796_s7 + $0x40] sm:$0xff]  ;;  %v649_v35 = vld [vmem:[%s3796_s7 + $0x28] sm:$0xff]  ;;  %v647_v37 = vld [vmem:[%s3796_s7 + $0x18] sm:$0xff] }
  0x28   : > { %571 = vmatpush.msra.mxu1 %v513_v17  ;;  %v668_v33 = vld [vmem:[%s3796_s7 + $0xc0] sm:$0xff]  ;;  %v667_v38 = vld [vmem:[%s3796_s7 + $0xb8] sm:$0xff]  ;;  %v646_v39 = vld [vmem:[%s3796_s7 + $0x10] sm:$0xff] }
  0x29   : > { %2151 = vmatmul.msk.f32.vlgmr.msra.gmra.mxu1 %vm532_vm1, %v2553_v14  ;;  %681 = vmatpush.msrb.mxu0 %v658_v18  ;;  %v648_v36 = vld [vmem:[%s3796_s7 + $0x20] sm:$0xff]  ;;  %v666_v40 = vld [vmem:[%s3796_s7 + $0xb0] sm:$0xff]  ;;  %v645_v41 = vld [vmem:[%s3796_s7 + $0x8] sm:$0xff] }
  0x2a   : > { %700 = vmatpush.msrb.mxu1 %v675_v19  ;;  %v665_v42 = vld [vmem:[%s3796_s7 + $0xa8] sm:$0xff]  ;;  %v644_v43 = vld [vmem:[%s3796_s7] sm:$0xff]  ;;  %v663_v45 = vld [vmem:[%s3796_s7 + $0x98] sm:$0xff] }
  0x2b   : > { %682 = vmatpush.msrb.mxu0 %v657_v20  ;;  %v664_v44 = vld [vmem:[%s3796_s7 + $0xa0] sm:$0xff]  ;;  %v662_v46 = vld [vmem:[%s3796_s7 + $0x90] sm:$0xff]  ;;  %v661_v47 = vld [vmem:[%s3796_s7 + $0x88] sm:$0xff] }
  0x2c   : > { %2154 = vmatmul.msk.f32.vlgmr.msrb.gmra.mxu3 %vm598_vm0, %v511_v12  ;;  %701 = vmatpush.msrb.mxu1 %v674_v21  ;;  %v660_v48 = vld [vmem:[%s3796_s7 + $0x80] sm:$0xff]  ;;  %v2682_v4 = vld [vmem:[%s3798_s9 + $0xc8] sm:$0xff]  ;;  %v2725_v11 = vld [vmem:[%s3798_s9 + $0xd0] sm:$0xff] }
  0x2d   : > { %683 = vmatpush.msrb.mxu0 %v656_v22  ;;  %v524_v49 = vld [vmem:[%s3794_s5] sm:$0x7]  ;;  %817 = vmatpush.msra.mxu3 %v2682_v4  ;;  %v2694_v6 = vld [vmem:[%s3798_s9 + $0x88] sm:$0xff]  ;;  %v2730_v12 = vld [vmem:[%s3798_s9 + $0xd8] sm:$0xff] }
  0x2e   : > { %702 = vmatpush.msrb.mxu1 %v673_v23  ;;  %v526_v50 = vperm.slane %v524_v49, 0  ;;  %v528_v53 = vperm.slane %v524_v49, 2  ;;  %v527_v58 = vperm.slane %v524_v49, 1  ;;  %v2677_v3 = vld [vmem:[%s3798_s9 + $0xc0] sm:$0xff]  ;;  %v2706_v8 = vld [vmem:[%s3798_s9 + $0x48] sm:$0xff]  ;;  %v2735_v13 = vld [vmem:[%s3798_s9 + $0x90] sm:$0xff] }
  0x2f   : > { %735 = vrot.lane.b32.xlu1 %v2553_v14, %s3807_s22  ;;  %684 = vmatpush.msrb.mxu0 %v655_v24  ;;  %v2689_v5 = vld [vmem:[%s3798_s9 + $0x80] sm:$0xff]  ;;  %v2716_v10 = vld [vmem:[%s3798_s9 + $0x8] sm:$0xff]  ;;  %v2742_v15 = vld [vmem:[%s3798_s9 + $0x98] sm:$0xff]  ;;  %s3207_s22 = scalar_lea.vmem [#allocation2], %s2143_s18 }
  0x30   : > { %703 = vmatpush.msrb.mxu1 %v672_v25  ;;  %797 = vmatpush.msrb.mxu2 %v2677_v3  ;;  %v2699_v7 = vld [vmem:[%s3798_s9 + $0x40] sm:$0xff]  ;;  %v2747_v16 = vld [vmem:[%s3798_s9 + $0x50] sm:$0xff]  ;;  %v2752_v17 = vld [vmem:[%s3798_s9 + $0x58] sm:$0xff] }
  0x31   : > { %685 = vmatpush.msrb.mxu0 %v654_v26  ;;  %818 = vmatpush.msra.mxu3 %v2694_v6  ;;  %v2711_v9 = vld [vmem:[%s3798_s9] sm:$0xff]  ;;  %v2759_v18 = vld [vmem:[%s3798_s9 + $0x10] sm:$0xff]  ;;  %v2764_v19 = vld [vmem:[%s3798_s9 + $0x18] sm:$0xff] }
  0x32   : > { %704 = vmatpush.msrb.mxu1 %v671_v27  ;;  %798 = vmatpush.msrb.mxu2 %v2689_v5  ;;  %v968_v24 = vld [vmem:[%s3799_s10 + $0x78] sm:$0xff]  ;;  %v967_v26 = vld [vmem:[%s3799_s10 + $0x70] sm:$0xff] }
  0x33   : > { %686 = vmatpush.msrb.mxu0 %v653_v28  ;;  %819 = vmatpush.msra.mxu3 %v2706_v8  ;;  %v984_v25 = vld [vmem:[%s3799_s10 + $0xf8] sm:$0xff]  ;;  %v983_v27 = vld [vmem:[%s3799_s10 + $0xf0] sm:$0xff]  ;;  %v966_v28 = vld [vmem:[%s3799_s10 + $0x68] sm:$0xff] }
  0x34   : > { %705 = vmatpush.msrb.mxu1 %v670_v29  ;;  %799 = vmatpush.msrb.mxu2 %v2699_v7  ;;  %v982_v29 = vld [vmem:[%s3799_s10 + $0xe8] sm:$0xff]  ;;  %v964_v49 = vld [vmem:[%s3799_s10 + $0x58] sm:$0xff] }
  0x35   : > { %687 = vmatpush.msrb.mxu0 %v652_v30  ;;  %820 = vmatpush.msra.mxu3 %v2716_v10  ;;  %v2793_v30 = vld [vmem:[%s3798_s9 + $0xe0] sm:$0xff] }
  0x36   : > { %706 = vmatpush.msrb.mxu1 %v669_v31  ;;  %800 = vmatpush.msrb.mxu2 %v2711_v9  ;;  %v2798_v31 = vld [vmem:[%s3798_s9 + $0xe8] sm:$0xff] }
  0x37   : > { %688 = vmatpush.msrb.mxu0 %v651_v32  ;;  %857 = vmatpush.msrb.mxu3 %v2730_v12 }
  0x38   : > { %707 = vmatpush.msrb.mxu1 %v668_v33  ;;  %837 = vmatpush.msra.mxu2 %v2725_v11  ;;  %v2809_v33 = vld [vmem:[%s3798_s9 + $0xa0] sm:$0xff] }
  0x39   : > { %689 = vmatpush.msrb.mxu0 %v650_v34  ;;  %858 = vmatpush.msrb.mxu3 %v2742_v15  ;;  %v2814_v34 = vld [vmem:[%s3798_s9 + $0xa8] sm:$0xff] }
  0x3a   : > { %708 = vmatpush.msrb.mxu1 %v667_v38  ;;  %838 = vmatpush.msra.mxu2 %v2735_v13  ;;  %v2838_v38 = vld [vmem:[%s3798_s9 + $0x28] sm:$0xff] }
  0x3b   : > { %690 = vmatpush.msrb.mxu0 %v649_v35  ;;  %859 = vmatpush.msrb.mxu3 %v2752_v17  ;;  %v2821_v35 = vld [vmem:[%s3798_s9 + $0x60] sm:$0xff] }
  0x3c   : > { %709 = vmatpush.msrb.mxu1 %v666_v40  ;;  %839 = vmatpush.msra.mxu2 %v2747_v16  ;;  %v2850_v40 = vld [vmem:[%s3798_s9 + $0xf8] sm:$0xff] }
  0x3d   : > { %691 = vmatpush.msrb.mxu0 %v648_v36  ;;  %860 = vmatpush.msrb.mxu3 %v2764_v19  ;;  %v2826_v36 = vld [vmem:[%s3798_s9 + $0x68] sm:$0xff] }
  0x3e   : > { %710 = vmatpush.msrb.mxu1 %v665_v42  ;;  %840 = vmatpush.msra.mxu2 %v2759_v18  ;;  %v2866_v42 = vld [vmem:[%s3798_s9 + $0xb8] sm:$0xff] }
  0x3f   : > { %692 = vmatpush.msrb.mxu0 %v647_v37  ;;  %v2833_v37 = vld [vmem:[%s3798_s9 + $0x20] sm:$0xff] }
  0x40   : > { %711 = vmatpush.msrb.mxu1 %v664_v44  ;;  %v2878_v44 = vld [vmem:[%s3798_s9 + $0x78] sm:$0xff] }
  0x41   : > { %693 = vmatpush.msrb.mxu0 %v646_v39  ;;  %v2845_v39 = vld [vmem:[%s3798_s9 + $0xf0] sm:$0xff] }
  0x42   : > { %712 = vmatpush.msrb.mxu1 %v663_v45  ;;  %v2885_v45 = vld [vmem:[%s3798_s9 + $0x30] sm:$0xff] }
  0x43   : > { %694 = vmatpush.msrb.mxu0 %v645_v41  ;;  %v2861_v41 = vld [vmem:[%s3798_s9 + $0xb0] sm:$0xff] }
  0x44   : > { %713 = vmatpush.msrb.mxu1 %v662_v46  ;;  %v2890_v46 = vld [vmem:[%s3798_s9 + $0x38] sm:$0xff] }
  0x45   : > { %695 = vmatpush.msrb.mxu0 %v644_v43  ;;  %v2873_v43 = vld [vmem:[%s3798_s9 + $0x70] sm:$0xff] }
  0x46   : > { %714 = vmatpush.msrb.mxu1 %v661_v47  ;;  %v965_v47 = vld [vmem:[%s3799_s10 + $0x60] sm:$0xff] }
  0x47   : > { %1081 = vmatpush.msra.mxu0 %v968_v24  ;;  %v975_v24 = vld [vmem:[%s3799_s10 + $0xb0] sm:$0xff] }
  0x48   : > { %715 = vmatpush.msrb.mxu1 %v660_v48  ;;  %v981_v48 = vld [vmem:[%s3799_s10 + $0xe0] sm:$0xff] }
  0x49   : > { %1082 = vmatpush.msra.mxu0 %v967_v26  ;;  %v1011_v26 = vld [vmem:[%s3799_s10 + $0x1d0] sm:$0xff] }
  0x4a   : > { %1101 = vmatpush.msra.mxu1 %v984_v25  ;;  %v995_v25 = vld [vmem:[%s3799_s10 + $0x150] sm:$0xff] }
  0x4b   : > { %1083 = vmatpush.msra.mxu0 %v966_v28  ;;  %v974_v28 = vld [vmem:[%s3799_s10 + $0xa8] sm:$0xff] }
  0x4c   : > { %1102 = vmatpush.msra.mxu1 %v983_v27  ;;  %v958_v27 = vld [vmem:[%s3799_s10 + $0x28] sm:$0xff] }
  0x4d   : > { %1084 = vmatpush.msra.mxu0 %v965_v47  ;;  %v1010_v47 = vld [vmem:[%s3799_s10 + $0x1c8] sm:$0xff] }
  0x4e   : > { %1103 = vmatpush.msra.mxu1 %v982_v29  ;;  %v994_v29 = vld [vmem:[%s3799_s10 + $0x148] sm:$0xff] }
  0x4f   : > { %1085 = vmatpush.msra.mxu0 %v964_v49  ;;  %v973_v49 = vld [vmem:[%s3799_s10 + $0xa0] sm:$0xff] }
  0x50   : > { %1104 = vmatpush.msra.mxu1 %v981_v48  ;;  %v957_v48 = vld [vmem:[%s3799_s10 + $0x20] sm:$0xff] }
  0x99   : > { %v722_v54 = vpop.permute.xlu1 %721 }
  0xa1   : > { %v736_v0 = vpop.permute.xlu1 %735 }
  0xa3   : > { %v553_v51 = vpop.f32.mrf.mxu0 }
  0xa4   : > { %v554_v52 = vadd.f32 %v553_v51, %v526_v50  ;;  %v980_v50 = vld [vmem:[%s3799_s10 + $0xd8] sm:$0xff] }
  0xa5   : > { %v1000_v51 = vld [vmem:[%s3799_s10 + $0x178] sm:$0xff]  ;;  %1105 = vmatpush.msra.mxu1 %v980_v50  ;;  %v993_v50 = vld [vmem:[%s3799_s10 + $0x140] sm:$0xff] }
  0xa6   : > { %v573_v60 = vpop.f32.mrf.mxu1 }
  0xa7   : > { %v619_v55 = vpop.f32.mrf.mxu3  ;;  %v574_v62 = vadd.f32 %v573_v60, %v527_v58  ;;  %v978_v58 = vld [vmem:[%s3799_s10 + $0xc8] sm:$0xff] }
  0xa8   : > { %v642_v56 = vmul.f32 %v619_v55, %v554_v52  ;;  %v593_v57 = vpop.f32.mrf.mxu2  ;;  %v1016_v52 = vld [vmem:[%s3799_s10 + $0x1f8] sm:$0xff]  ;;  %v999_v55 = vld [vmem:[%s3799_s10 + $0x170] sm:$0xff]  ;;  %v998_v60 = vld [vmem:[%s3799_s10 + $0x168] sm:$0xff] }
  0xa9   : > { %v2668_v59 = vadd.f32 %v593_v57, %v528_v53  ;;  %v963_v53 = vld [vmem:[%s3799_s10 + $0x50] sm:$0xff]  ;;  %v962_v57 = vld [vmem:[%s3799_s10 + $0x48] sm:$0xff] }
  0xaa   : > { %696 = vmatmul.f32.vlgmr.msrb.gmra.mxu0 %v642_v56  ;;  %v1015_v56 = vld [vmem:[%s3799_s10 + $0x1f0] sm:$0xff] }
  0xab   : > { %781 = vrot.lane.b32.xlu0 %v2668_v59, %s2377_s6  ;;  %v724_v61 = vmul.f32 %v722_v54, %v2668_v59  ;;  %v738_v2 = vmul.f32 %v736_v0, %v2668_v59  ;;  %v979_v54 = vld [vmem:[%s3799_s10 + $0xd0] sm:$0xff]  ;;  %1086 = vmatpush.msra.mxu0 %v963_v53  ;;  %v961_v0 = vld [vmem:[%s3799_s10 + $0x40] sm:$0xff]  ;;  %v972_v53 = vld [vmem:[%s3799_s10 + $0x98] sm:$0xff] }
  0xac   : > { %1106 = vmatpush.msra.mxu1 %v979_v54  ;;  %v992_v54 = vld [vmem:[%s3799_s10 + $0x138] sm:$0xff] }
  0xad   : > { %726 = vrot.lane.b32.xlu2 %v724_v61, %s2377_s6  ;;  %v1014_v61 = vld [vmem:[%s3799_s10 + $0x1e8] sm:$0xff]  ;;  %1087 = vmatpush.msra.mxu0 %v962_v57  ;;  %v971_v57 = vld [vmem:[%s3799_s10 + $0x90] sm:$0xff] }
  0xae   : > { %1107 = vmatpush.msra.mxu1 %v978_v58  ;;  %v991_v58 = vld [vmem:[%s3799_s10 + $0x130] sm:$0xff] }
  0xaf   : > { %v639_v63 = vpop.f32.mrf.mxu3  ;;  %1088 = vmatpush.msra.mxu0 %v961_v0  ;;  %v1006_v0 = vld [vmem:[%s3799_s10 + $0x1a8] sm:$0xff] }
  0xb0   : > { %v643_v1 = vmul.f32 %v639_v63, %v574_v62  ;;  %v997_v62 = vld [vmem:[%s3799_s10 + $0x160] sm:$0xff] }
  0xb1   : > { %v1013_v63 = vld [vmem:[%s3799_s10 + $0x1e0] sm:$0xff] }
  0xb2   : > { %716 = vmatmul.f32.vlgmr.msrb.gmra.mxu1 %v643_v1  ;;  %v977_v1 = vld [vmem:[%s3799_s10 + $0xc0] sm:$0xff] }
  0xb3   : > { %1108 = vmatpush.msra.mxu1 %v977_v1  ;;  %v953_v1 = vld [vmem:[%s3799_s10] sm:$0xff] }
  0xb5   : > { %740 = vrot.lane.b32.xlu2 %v738_v2, %s2377_s6  ;;  %v960_v2 = vld [vmem:[%s3799_s10 + $0x38] sm:$0xff] }
  0xb6   : > { %1089 = vmatpush.msra.mxu0 %v960_v2  ;;  %v969_v2 = vld [vmem:[%s3799_s10 + $0x80] sm:$0xff] }
  0xbd   : > { %677 = vrot.lane.b32.xlu2 %v2668_v59, %s2378_s14 }
 0x107   : > { %v727_v20 = vpop.permute.xlu2 %726 }
 0x108   : > { %v729_v21 = vsel %vm532_vm1, %v727_v20, 0.0  ;;  %v976_v20 = vld [vmem:[%s3799_s10 + $0xb8] sm:$0xff] }
 0x109   : > { %730 = vadd.xlane.f32.xlu1 %v729_v21  ;;  %v996_v21 = vld [vmem:[%s3799_s10 + $0x158] sm:$0xff]  ;;  %1109 = vmatpush.msra.mxu1 %v976_v20  ;;  %v989_v20 = vld [vmem:[%s3799_s10 + $0x120] sm:$0xff] }
 0x10b   : > { %1110 = vmatpush.msra.mxu1 %v975_v24  ;;  %v988_v24 = vld [vmem:[%s3799_s10 + $0x118] sm:$0xff] }
 0x10d   : > { %1111 = vmatpush.msra.mxu1 %v974_v28  ;;  %v987_v28 = vld [vmem:[%s3799_s10 + $0x110] sm:$0xff] }
 0x10f   : > { %v741_v22 = vpop.permute.xlu2 %740  ;;  %1112 = vmatpush.msra.mxu1 %v973_v49  ;;  %v986_v49 = vld [vmem:[%s3799_s10 + $0x108] sm:$0xff] }
 0x110   : > { %v743_v23 = vsel %vm532_vm1, %v741_v22, 0.0  ;;  %v1012_v22 = vld [vmem:[%s3799_s10 + $0x1d8] sm:$0xff] }
 0x111   : > { %744 = vadd.xlane.f32.xlu2 %v743_v23  ;;  %v959_v23 = vld [vmem:[%s3799_s10 + $0x30] sm:$0xff]  ;;  %1113 = vmatpush.msra.mxu1 %v972_v53  ;;  %v985_v53 = vld [vmem:[%s3799_s10 + $0x100] sm:$0xff] }
 0x112   : > { %1090 = vmatpush.msra.mxu0 %v959_v23  ;;  %v1048_v23 = vld [vmem:[%s3799_s10 + $0x2f8] sm:$0xff] }
 0x113   : > { %1114 = vmatpush.msra.mxu1 %v971_v57 }
 0x114   : > { %1091 = vmatpush.msra.mxu0 %v958_v27  ;;  %v1047_v27 = vld [vmem:[%s3799_s10 + $0x2f0] sm:$0xff] }
 0x116   : > { %1092 = vmatpush.msra.mxu0 %v957_v48  ;;  %v1046_v48 = vld [vmem:[%s3799_s10 + $0x2e8] sm:$0xff] }
 0x117   : > { %v678_v57 = vpop.permute.xlu2 %677 }
 0x11d   : > { %v2800_v32 = vpop.permute.xlu0 %781 }
 0x11e   : > { %2155 = vmatmul.msk.f32.vlgmr.msrb.gmra.mxu2 %vm532_vm1, %v2800_v32  ;;  %2156 = vmatmul.msk.f32.vlgmr.msra.gmra.mxu3 %vm532_vm1, %v2800_v32 }
 0x11f   : > { %877 = vmatpush.msrb.mxu2 %v2793_v30  ;;  %897 = vmatpush.msra.mxu3 %v2798_v31 }
 0x121   : > { %878 = vmatpush.msrb.mxu2 %v2809_v33  ;;  %898 = vmatpush.msra.mxu3 %v2814_v34 }
 0x123   : > { %879 = vmatpush.msrb.mxu2 %v2821_v35  ;;  %899 = vmatpush.msra.mxu3 %v2826_v36 }
 0x125   : > { %880 = vmatpush.msrb.mxu2 %v2833_v37  ;;  %900 = vmatpush.msra.mxu3 %v2838_v38 }
 0x126   : > { %2157 = vmatmul.msk.f32.vlgmr.msra.gmra.mxu2 %vm532_vm1, %v2800_v32  ;;  %2158 = vmatmul.msk.f32.vlgmr.msrb.gmra.mxu3 %vm532_vm1, %v2800_v32 }
 0x127   : > { %917 = vmatpush.msra.mxu2 %v2845_v39  ;;  %937 = vmatpush.msrb.mxu3 %v2850_v40 }
 0x129   : > { %918 = vmatpush.msra.mxu2 %v2861_v41  ;;  %938 = vmatpush.msrb.mxu3 %v2866_v42 }
 0x12b   : > { %919 = vmatpush.msra.mxu2 %v2873_v43  ;;  %939 = vmatpush.msrb.mxu3 %v2878_v44 }
 0x12d   : > { %920 = vmatpush.msra.mxu2 %v2885_v45  ;;  %940 = vmatpush.msrb.mxu3 %v2890_v46 }
 0x12e   : > { %2159 = vmatmul.msk.f32.vlgmr.msrb.gmra.mxu2 %vm532_vm1, %v2800_v32  ;;  %2160 = vmatmul.msk.f32.vlgmr.msra.gmra.mxu3 %vm532_vm1, %v2800_v32 }
 0x12f   : > { %1121 = vmatpush.msrb.mxu2 %v1000_v51  ;;  %1141 = vmatpush.msra.mxu3 %v1016_v52  ;;  %v1009_v51 = vld [vmem:[%s3799_s10 + $0x1c0] sm:$0xff]  ;;  %v956_v52 = vld [vmem:[%s3799_s10 + $0x18] sm:$0xff] }
 0x130   : > { %1093 = vmatpush.msra.mxu0 %v956_v52  ;;  %v1045_v52 = vld [vmem:[%s3799_s10 + $0x2e0] sm:$0xff] }
 0x131   : > { %1122 = vmatpush.msrb.mxu2 %v999_v55  ;;  %1142 = vmatpush.msra.mxu3 %v1015_v56  ;;  %v1008_v55 = vld [vmem:[%s3799_s10 + $0x1b8] sm:$0xff]  ;;  %v955_v56 = vld [vmem:[%s3799_s10 + $0x10] sm:$0xff] }
 0x132   : > { %1094 = vmatpush.msra.mxu0 %v955_v56  ;;  %v1044_v56 = vld [vmem:[%s3799_s10 + $0x2d8] sm:$0xff] }
 0x133   : > { %1123 = vmatpush.msrb.mxu2 %v998_v60  ;;  %1143 = vmatpush.msra.mxu3 %v1014_v61  ;;  %v1007_v60 = vld [vmem:[%s3799_s10 + $0x1b0] sm:$0xff]  ;;  %v954_v61 = vld [vmem:[%s3799_s10 + $0x8] sm:$0xff] }
 0x134   : > { %1095 = vmatpush.msra.mxu0 %v954_v61  ;;  %v1027_v61 = vld [vmem:[%s3799_s10 + $0x250] sm:$0xff] }
 0x135   : > { %1124 = vmatpush.msrb.mxu2 %v997_v62  ;;  %1144 = vmatpush.msra.mxu3 %v1013_v63  ;;  %v970_v62 = vld [vmem:[%s3799_s10 + $0x88] sm:$0xff] }
 0x136   : > { %2161 = vmatmul.msk.f32.vlgmr.msra.gmra.mxu2 %vm532_vm1, %v2800_v32  ;;  %2162 = vmatmul.msk.f32.vlgmr.msrb.gmra.mxu3 %vm532_vm1, %v2800_v32  ;;  %v990_v63 = vld [vmem:[%s3799_s10 + $0x128] sm:$0xff] }
 0x137   : > { %1125 = vmatpush.msrb.mxu2 %v996_v21  ;;  %1145 = vmatpush.msra.mxu3 %v1012_v22  ;;  %v1005_v21 = vld [vmem:[%s3799_s10 + $0x1a0] sm:$0xff]  ;;  %v1032_v22 = vld [vmem:[%s3799_s10 + $0x278] sm:$0xff] }
 0x138   : > { %1115 = vmatpush.msra.mxu1 %v970_v62  ;;  %1096 = vmatpush.msra.mxu0 %v953_v1  ;;  %v1043_v62 = vld [vmem:[%s3799_s10 + $0x2d0] sm:$0xff]  ;;  %v1026_v1 = vld [vmem:[%s3799_s10 + $0x248] sm:$0xff] }
 0x139   : > { %1126 = vmatpush.msrb.mxu2 %v995_v25  ;;  %1146 = vmatpush.msra.mxu3 %v1011_v26  ;;  %v1004_v25 = vld [vmem:[%s3799_s10 + $0x198] sm:$0xff]  ;;  %v1031_v26 = vld [vmem:[%s3799_s10 + $0x270] sm:$0xff] }
 0x13a   : > { %1116 = vmatpush.msra.mxu1 %v969_v2  ;;  %1161 = vmatpush.msrb.mxu0 %v1032_v22  ;;  %v1042_v2 = vld [vmem:[%s3799_s10 + $0x2c8] sm:$0xff]  ;;  %v697_v22 = vpop.f32.mrf.mxu0 }
 0x13b   : > { %1127 = vmatpush.msrb.mxu2 %v994_v29  ;;  %1147 = vmatpush.msra.mxu3 %v1010_v47  ;;  %v1003_v29 = vld [vmem:[%s3799_s10 + $0x190] sm:$0xff]  ;;  %v1030_v47 = vld [vmem:[%s3799_s10 + $0x268] sm:$0xff] }
 0x13c   : > { %1181 = vmatpush.msrb.mxu1 %v1048_v23  ;;  %1162 = vmatpush.msrb.mxu0 %v1031_v26  ;;  %v1025_v23 = vld [vmem:[%s3799_s10 + $0x240] sm:$0xff] }
 0x13d   : > { %1128 = vmatpush.msrb.mxu2 %v993_v50  ;;  %1148 = vmatpush.msra.mxu3 %v1009_v51  ;;  %v1002_v50 = vld [vmem:[%s3799_s10 + $0x188] sm:$0xff]  ;;  %v1029_v51 = vld [vmem:[%s3799_s10 + $0x260] sm:$0xff] }
 0x13e   : > { %1182 = vmatpush.msrb.mxu1 %v1047_v27  ;;  %1163 = vmatpush.msrb.mxu0 %v1030_v47  ;;  %v1077_v26 = vld [vmem:[%s3799_s10 + $0x3e0] sm:$0xff]  ;;  %v717_v27 = vpop.f32.mrf.mxu1  ;;  %v1040_v47 = vld [vmem:[%s3799_s10 + $0x2b8] sm:$0xff] }
 0x13f   : > { %1129 = vmatpush.msrb.mxu2 %v992_v54  ;;  %1149 = vmatpush.msra.mxu3 %v1008_v55  ;;  %v1001_v54 = vld [vmem:[%s3799_s10 + $0x180] sm:$0xff]  ;;  %v1028_v55 = vld [vmem:[%s3799_s10 + $0x258] sm:$0xff] }
 0x140   : > { %1183 = vmatpush.msrb.mxu1 %v1046_v48  ;;  %1164 = vmatpush.msrb.mxu0 %v1029_v51  ;;  %v1060_v48 = vld [vmem:[%s3799_s10 + $0x358] sm:$0xff] }
 0x141   : > { %1130 = vmatpush.msrb.mxu2 %v991_v58  ;;  %1150 = vmatpush.msra.mxu3 %v1007_v60  ;;  %v1064_v58 = vld [vmem:[%s3799_s10 + $0x378] sm:$0xff] }
 0x142   : > { %1184 = vmatpush.msrb.mxu1 %v1045_v52  ;;  %v1080_v60 = vld [vmem:[%s3799_s10 + $0x3f8] sm:$0xff]  ;;  %1165 = vmatpush.msrb.mxu0 %v1028_v55  ;;  %v1023_v52 = vld [vmem:[%s3799_s10 + $0x230] sm:$0xff] }
 0x143   : > { %1131 = vmatpush.msrb.mxu2 %v990_v63  ;;  %1151 = vmatpush.msra.mxu3 %v1006_v0  ;;  %v1063_v63 = vld [vmem:[%s3799_s10 + $0x370] sm:$0xff]  ;;  %v1076_v51 = vld [vmem:[%s3799_s10 + $0x3d8] sm:$0xff] }
 0x144   : > { %1185 = vmatpush.msrb.mxu1 %v1044_v56  ;;  %v1079_v0 = vld [vmem:[%s3799_s10 + $0x3f0] sm:$0xff]  ;;  %1166 = vmatpush.msrb.mxu0 %v1027_v61  ;;  %v1058_v61 = vld [vmem:[%s3799_s10 + $0x348] sm:$0xff] }
 0x145   : > { %1132 = vmatpush.msrb.mxu2 %v989_v20  ;;  %1152 = vmatpush.msra.mxu3 %v1005_v21  ;;  %v1062_v20 = vld [vmem:[%s3799_s10 + $0x368] sm:$0xff]  ;;  %v1075_v55 = vld [vmem:[%s3799_s10 + $0x3d0] sm:$0xff] }
 0x146   : > { %1186 = vmatpush.msrb.mxu1 %v1043_v62  ;;  %v1078_v21 = vld [vmem:[%s3799_s10 + $0x3e8] sm:$0xff]  ;;  %1167 = vmatpush.msrb.mxu0 %v1026_v1  ;;  %v1057_v1 = vld [vmem:[%s3799_s10 + $0x340] sm:$0xff] }
 0x147   : > { %1133 = vmatpush.msrb.mxu2 %v988_v24  ;;  %1153 = vmatpush.msra.mxu3 %v1004_v25  ;;  %v1041_v24 = vld [vmem:[%s3799_s10 + $0x2c0] sm:$0xff] }
 0x148   : > { %1187 = vmatpush.msrb.mxu1 %v1042_v2  ;;  %v1061_v25 = vld [vmem:[%s3799_s10 + $0x360] sm:$0xff]  ;;  %1168 = vmatpush.msrb.mxu0 %v1025_v23  ;;  %v1072_v23 = vld [vmem:[%s3799_s10 + $0x3b8] sm:$0xff] }
 0x149   : > { %1134 = vmatpush.msrb.mxu2 %v987_v28  ;;  %1154 = vmatpush.msra.mxu3 %v1003_v29  ;;  %v1024_v29 = vld [vmem:[%s3799_s10 + $0x238] sm:$0xff]  ;;  %v1073_v2 = vld [vmem:[%s3799_s10 + $0x3c0] sm:$0xff] }
 0x14a   : > { %1188 = vmatpush.msrb.mxu1 %v1041_v24  ;;  %1169 = vmatpush.msrb.mxu0 %v1024_v29  ;;  %v1019_v24 = vld [vmem:[%s3799_s10 + $0x210] sm:$0xff]  ;;  %v1034_v29 = vld [vmem:[%s3799_s10 + $0x288] sm:$0xff] }
 0x14b   : > { %1135 = vmatpush.msrb.mxu2 %v986_v49  ;;  %1155 = vmatpush.msra.mxu3 %v1002_v50  ;;  %v698_v49 = vadd.f32 %v697_v22, %v678_v57  ;;  %v1056_v22 = vld [vmem:[%s3799_s10 + $0x338] sm:$0xff] }
 0x14c   : > { %1189 = vmatpush.msrb.mxu1 %v1040_v47  ;;  %1170 = vmatpush.msrb.mxu0 %v1023_v52  ;;  %v1054_v47 = vld [vmem:[%s3799_s10 + $0x328] sm:$0xff]  ;;  %v1069_v52 = vld [vmem:[%s3799_s10 + $0x3a0] sm:$0xff] }
 0x14d   : > { %1136 = vmatpush.msrb.mxu2 %v985_v53  ;;  %1156 = vmatpush.msra.mxu3 %v1001_v54  ;;  %v1039_v53 = vld [vmem:[%s3799_s10 + $0x2b0] sm:$0xff]  ;;  %v3179_v56 = vadd.f32 %v717_v27, %v698_v49  ;;  %v1017_v49 = vld [vmem:[%s3799_s10 + $0x200] sm:$0xff] }
 0x14e   : > { %v1059_v54 = vld [vmem:[%s3799_s10 + $0x350] sm:$0xff]  ;;  %1190 = vmatpush.msrb.mxu1 %v1039_v53  ;;  %v1052_v53 = vld [vmem:[%s3799_s10 + $0x318] sm:$0xff] }
 0x14f   : > { %1201 = vmatpush.msra.mxu2 %v1064_v58  ;;  %1221 = vmatpush.msrb.mxu3 %v1080_v60  ;;  %3830 = vst [vmem:[#allocation12_spill] sm:$0xff] %v3179_v56  ;;  %v1022_v58 = vld [vmem:[%s3799_s10 + $0x228] sm:$0xff]  ;;  %v1071_v27 = vld [vmem:[%s3799_s10 + $0x3b0] sm:$0xff] }
 0x150   : > { %v1038_v60 = vld [vmem:[%s3799_s10 + $0x2a8] sm:$0xff]  ;;  %1171 = vmatpush.msrb.mxu0 %v1022_v58 }
 0x151   : > { %1202 = vmatpush.msra.mxu2 %v1063_v63  ;;  %1222 = vmatpush.msrb.mxu3 %v1079_v0  ;;  %v1021_v63 = vld [vmem:[%s3799_s10 + $0x220] sm:$0xff]  ;;  %v1050_v58 = vld [vmem:[%s3799_s10 + $0x308] sm:$0xff] }
 0x152   : > { %1191 = vmatpush.msrb.mxu1 %v1038_v60  ;;  %v1037_v0 = vld [vmem:[%s3799_s10 + $0x2a0] sm:$0xff]  ;;  %1172 = vmatpush.msrb.mxu0 %v1021_v63  ;;  %v1066_v60 = vld [vmem:[%s3799_s10 + $0x388] sm:$0xff] }
 0x153   : > { %1203 = vmatpush.msra.mxu2 %v1062_v20  ;;  %1223 = vmatpush.msrb.mxu3 %v1078_v21  ;;  %v1020_v20 = vld [vmem:[%s3799_s10 + $0x218] sm:$0xff]  ;;  %v3293_v63 = vld [vmem:[%s3287_s16 + $0x8] sm:$0xff] }
 0x154   : > { %1192 = vmatpush.msrb.mxu1 %v1037_v0  ;;  %v1036_v21 = vld [vmem:[%s3799_s10 + $0x298] sm:$0xff]  ;;  %1173 = vmatpush.msrb.mxu0 %v1020_v20  ;;  %3832 = vst [vmem:[#allocation14_spill] sm:$0xff] %v3293_v63 }
 0x155   : > { %1204 = vmatpush.msra.mxu2 %v1061_v25  ;;  %1224 = vmatpush.msrb.mxu3 %v1077_v26  ;;  %v1035_v25 = vld [vmem:[%s3799_s10 + $0x290] sm:$0xff] }
 0x156   : > { %1193 = vmatpush.msrb.mxu1 %v1036_v21  ;;  %v1055_v26 = vld [vmem:[%s3799_s10 + $0x330] sm:$0xff]  ;;  %1174 = vmatpush.msrb.mxu0 %v1019_v24  ;;  %v3300_v21 = vld [vmem:[%s3797_s8 + $0xc0] sm:$0xff]  ;;  %v3315_v24 = vld [vmem:[%s3797_s8 + $0x88] sm:$0xff] }
 0x157   : > { %1205 = vmatpush.msra.mxu2 %v1060_v48  ;;  %1225 = vmatpush.msrb.mxu3 %v1076_v51  ;;  %v1070_v48 = vld [vmem:[%s3799_s10 + $0x3a8] sm:$0xff]  ;;  %v1053_v51 = vld [vmem:[%s3799_s10 + $0x320] sm:$0xff] }
 0x158   : > { %1194 = vmatpush.msrb.mxu1 %v1035_v25  ;;  %v3322_v25 = vld [vmem:[%s3797_s8 + $0x40] sm:$0xff] }
 0x159   : > { %1206 = vmatpush.msra.mxu2 %v1059_v54  ;;  %1226 = vmatpush.msrb.mxu3 %v1075_v55  ;;  %v1068_v54 = vld [vmem:[%s3799_s10 + $0x398] sm:$0xff]  ;;  %v1051_v55 = vld [vmem:[%s3799_s10 + $0x310] sm:$0xff] }
 0x15a   : > { %1195 = vmatpush.msrb.mxu1 %v1034_v29  ;;  %v3340_v29 = vld [vmem:[%s3797_s8] sm:$0xff] }
 0x15b   : > { %1207 = vmatpush.msra.mxu2 %v1058_v61  ;;  %v1049_v61 = vld [vmem:[%s3799_s10 + $0x300] sm:$0xff] }
 0x15d   : > { %1208 = vmatpush.msra.mxu2 %v1057_v1 }
 0x15f   : > { %1209 = vmatpush.msra.mxu2 %v1056_v22  ;;  %v3305_v22 = vld [vmem:[%s3797_s8 + $0xc8] sm:$0xff] }
 0x161   : > { %1210 = vmatpush.msra.mxu2 %v1055_v26  ;;  %v3327_v26 = vld [vmem:[%s3797_s8 + $0x48] sm:$0xff] }
 0x163   : > { %1211 = vmatpush.msra.mxu2 %v1054_v47  ;;  %v3345_v47 = vld [vmem:[%s3797_s8 + $0x8] sm:$0xff] }
 0x165   : > { %1212 = vmatpush.msra.mxu2 %v1053_v51 }
 0x167   : > { %1213 = vmatpush.msra.mxu2 %v1052_v53  ;;  %v3359_v53 = vld [vmem:[%s3797_s8 + $0xd8] sm:$0xff] }
 0x169   : > { %1214 = vmatpush.msra.mxu2 %v1051_v55  ;;  %v3371_v55 = vld [vmem:[%s3797_s8 + $0x98] sm:$0xff] }
 0x16b   : > { %1215 = vmatpush.msra.mxu2 %v1050_v58  ;;  %v3383_v58 = vld [vmem:[%s3797_s8 + $0x58] sm:$0xff] }
 0x16d   : > { %1216 = vmatpush.msra.mxu2 %v1049_v61  ;;  %v3389_v61 = vld [vmem:[%s3287_s16 + $0x28] sm:$0xff] }
 0x16e   : > { %3836 = vst [vmem:[#allocation18_spill] sm:$0xff] %v3389_v61 }
 0x184   : > { %v745_v28 = vpop.xlane.xlu2 %744 }
 0x185   : > { %v746_v50 = vmul.f32 %v745_v28, %v2668_v59  ;;  %v1018_v28 = vld [vmem:[%s3799_s10 + $0x208] sm:$0xff] }
 0x186   : > { %1175 = vmatpush.msrb.mxu0 %v1018_v28  ;;  %v3333_v28 = vld [vmem:[%s3287_s16 + $0x18] sm:$0xff] }
 0x187   : > { %v747_v57 = vadd.f32 %v746_v50, %v2553_v14  ;;  %v1074_v14 = vld [vmem:[%s3799_s10 + $0x3c8] sm:$0xff]  ;;  %v1033_v50 = vld [vmem:[%s3799_s10 + $0x280] sm:$0xff]  ;;  %3834 = vst [vmem:[#allocation16_spill] sm:$0xff] %v3333_v28 }
 0x188   : > { %1227 = vmatpush.msrb.mxu3 %v1074_v14  ;;  %1176 = vmatpush.msrb.mxu0 %v1017_v49  ;;  %v3290_v14 = vld [vmem:[%s3287_s16] sm:$0xff] }
 0x189   : > { %v748_v62 = vadd.f32 %v747_v57, %v3179_v56  ;;  %1196 = vmatpush.msrb.mxu1 %v1033_v50  ;;  %v1067_v57 = vld [vmem:[%s3799_s10 + $0x390] sm:$0xff]  ;;  %3831 = vst [vmem:[#allocation13_spill] sm:$0xff] %v3290_v14 }
 0x18a   : > { %1228 = vmatpush.msrb.mxu3 %v1073_v2 }
 0x18b   : > { %1960 = vst.msk [vmem:[%s3207_s22] sm:$0xff] %vm532_vm1, %v748_v62  ;;  %v1065_v62 = vld [vmem:[%s3799_s10 + $0x380] sm:$0xff] }
 0x18c   : > { %1229 = vmatpush.msrb.mxu3 %v1072_v23  ;;  %v3310_v23 = vld [vmem:[%s3797_s8 + $0x80] sm:$0xff] }
 0x18e   : > { %1230 = vmatpush.msrb.mxu3 %v1071_v27  ;;  %v3330_v27 = vld [vmem:[%s3287_s16 + $0x10] sm:$0xff] }
 0x18f   : > { %3833 = vst [vmem:[#allocation15_spill] sm:$0xff] %v3330_v27 }
 0x190   : > { %1231 = vmatpush.msrb.mxu3 %v1070_v48 }
 0x192   : > { %1232 = vmatpush.msrb.mxu3 %v1069_v52  ;;  %v3354_v52 = vld [vmem:[%s3797_s8 + $0xd0] sm:$0xff] }
 0x194   : > { %1233 = vmatpush.msrb.mxu3 %v1068_v54  ;;  %v3366_v54 = vld [vmem:[%s3797_s8 + $0x90] sm:$0xff] }
 0x196   : > { %1234 = vmatpush.msrb.mxu3 %v1067_v57  ;;  %v3378_v57 = vld [vmem:[%s3797_s8 + $0x50] sm:$0xff] }
 0x198   : > { %1235 = vmatpush.msrb.mxu3 %v1066_v60  ;;  %v3386_v60 = vld [vmem:[%s3287_s16 + $0x20] sm:$0xff] }
 0x199   : > { %3835 = vst [vmem:[#allocation17_spill] sm:$0xff] %v3386_v60 }
 0x19a   : > { %1236 = vmatpush.msrb.mxu3 %v1065_v62  ;;  %v3396_v62 = vld [vmem:[%s3797_s8 + $0x10] sm:$0xff] }
 0x1a1   : > { %v802_v0 = vpop.f32.mrf.mxu2  ;;  %v822_v1 = vpop.f32.mrf.mxu3 }
 0x1a2   : > { %v945_v2 = vmul.f32 %v802_v0, %v3290_v14  ;;  %v946_v20 = vmul.f32 %v822_v1, %v3293_v63  ;;  %v3401_v0 = vld [vmem:[%s3797_s8 + $0x18] sm:$0xff] }
 0x1a4   : > { %1097 = vmatmul.f32.vlgmr.msra.gmra.mxu0 %v945_v2  ;;  %1117 = vmatmul.f32.vlgmr.msra.gmra.mxu1 %v946_v20 }
 0x1a5   : > { %1294 = vmatpush.msra.mxu0 %v3300_v21  ;;  %1314 = vmatpush.msra.mxu1 %v3305_v22 }
 0x1a7   : > { %1295 = vmatpush.msra.mxu0 %v3310_v23  ;;  %1315 = vmatpush.msra.mxu1 %v3315_v24 }
 0x1a9   : > { %v842_v48 = vpop.f32.mrf.mxu2  ;;  %v862_v49 = vpop.f32.mrf.mxu3  ;;  %1296 = vmatpush.msra.mxu0 %v3322_v25  ;;  %1316 = vmatpush.msra.mxu1 %v3327_v26 }
 0x1aa   : > { %v947_v50 = vmul.f32 %v842_v48, %v3330_v27  ;;  %v948_v51 = vmul.f32 %v862_v49, %v3333_v28  ;;  %v3410_v49 = vld [vmem:[%s3797_s8 + $0xe0] sm:$0xff]  ;;  %v3457_v28 = vld [vmem:[%s3797_s8 + $0x28] sm:$0xff] }
 0x1ab   : > { %1297 = vmatpush.msra.mxu0 %v3340_v29  ;;  %1317 = vmatpush.msra.mxu1 %v3345_v47 }
 0x1ac   : > { %1137 = vmatmul.f32.vlgmr.msrb.gmra.mxu2 %v947_v50  ;;  %1157 = vmatmul.f32.vlgmr.msra.gmra.mxu3 %v948_v51  ;;  %v3415_v50 = vld [vmem:[%s3797_s8 + $0xe8] sm:$0xff]  ;;  %v3422_v51 = vld [vmem:[%s3797_s8 + $0xa0] sm:$0xff] }
 0x1ad   : > { %1334 = vmatpush.msrb.mxu2 %v3354_v52  ;;  %1354 = vmatpush.msra.mxu3 %v3359_v53  ;;  %3837 = vst [vmem:[#allocation19_spill] sm:$0xff] %v3422_v51 }
 0x1af   : > { %1335 = vmatpush.msrb.mxu2 %v3366_v54  ;;  %1355 = vmatpush.msra.mxu3 %v3371_v55 }
 0x1b1   : > { %v882_v1 = vpop.f32.mrf.mxu2  ;;  %v902_v2 = vpop.f32.mrf.mxu3  ;;  %1336 = vmatpush.msrb.mxu2 %v3378_v57  ;;  %1356 = vmatpush.msra.mxu3 %v3383_v58 }
 0x1b2   : > { %v949_v20 = vmul.f32 %v882_v1, %v3386_v60  ;;  %v950_v48 = vmul.f32 %v902_v2, %v3389_v61  ;;  %v3427_v1 = vld [vmem:[%s3797_s8 + $0xa8] sm:$0xff]  ;;  %v3434_v2 = vld [vmem:[%s3797_s8 + $0x60] sm:$0xff]  ;;  %v3445_v61 = vld [vmem:[%s3287_s16 + $0x38] sm:$0xff] }
 0x1b3   : > { %1337 = vmatpush.msrb.mxu2 %v3396_v62  ;;  %1357 = vmatpush.msra.mxu3 %v3401_v0  ;;  %3838 = vst [vmem:[#allocation20_spill] sm:$0xff] %v3427_v1  ;;  %v3452_v60 = vld [vmem:[%s3797_s8 + $0x20] sm:$0xff] }
 0x1b4   : > { %1177 = vmatmul.f32.vlgmr.msrb.gmra.mxu0 %v949_v20  ;;  %1197 = vmatmul.f32.vlgmr.msrb.gmra.mxu1 %v950_v48  ;;  %v3439_v20 = vld [vmem:[%s3797_s8 + $0x68] sm:$0xff]  ;;  %v3442_v48 = vld [vmem:[%s3287_s16 + $0x30] sm:$0xff]  ;;  %3839 = vst [vmem:[#allocation21_spill] sm:$0xff] %v3445_v61 }
 0x1b5   : > { %1374 = vmatpush.msrb.mxu0 %v3410_v49  ;;  %1394 = vmatpush.msrb.mxu1 %v3415_v50 }
 0x1b7   : > { %1375 = vmatpush.msrb.mxu0 %v3422_v51  ;;  %1395 = vmatpush.msrb.mxu1 %v3427_v1  ;;  %v3468_v1 = vld [vmem:[%s3797_s8 + $0xf0] sm:$0xff]  ;;  %v3473_v51 = vld [vmem:[%s3797_s8 + $0xf8] sm:$0xff] }
 0x1b9   : > { %v922_v27 = vpop.f32.mrf.mxu2  ;;  %v942_v63 = vpop.f32.mrf.mxu3  ;;  %1376 = vmatpush.msrb.mxu0 %v3434_v2  ;;  %1396 = vmatpush.msrb.mxu1 %v3439_v20 }
 0x1ba   : > { %v951_v14 = vmul.f32 %v922_v27, %v3442_v48  ;;  %v952_v56 = vmul.f32 %v942_v63, %v3445_v61  ;;  %v3482_v63 = vld [vmem:[%s3797_s8 + $0xb0] sm:$0xff]  ;;  %v3487_v27 = vld [vmem:[%s3797_s8 + $0xb8] sm:$0xff] }
 0x1bb   : > { %1377 = vmatpush.msrb.mxu0 %v3452_v60  ;;  %1397 = vmatpush.msrb.mxu1 %v3457_v28  ;;  %v3512_v61 = vld [vmem:[%s3797_s8 + $0x30] sm:$0xff] }
 0x1bc   : > { %1217 = vmatmul.f32.vlgmr.msra.gmra.mxu2 %v951_v14  ;;  %1237 = vmatmul.f32.vlgmr.msrb.gmra.mxu3 %v952_v56  ;;  %v3494_v56 = vld [vmem:[%s3797_s8 + $0x70] sm:$0xff]  ;;  %v3499_v14 = vld [vmem:[%s3797_s8 + $0x78] sm:$0xff] }
 0x1bd   : > { %2163 = vmatmul.msk.f32.vlgmr.msra.gmra.mxu0 %vm532_vm1, %v2668_v59  ;;  %2164 = vmatmul.msk.f32.vlgmr.msra.gmra.mxu1 %vm532_vm1, %v2668_v59 }
 0x1be   : > { %1414 = vmatpush.msra.mxu2 %v3468_v1  ;;  %1434 = vmatpush.msrb.mxu3 %v3473_v51 }
 0x1bf   : > { %1457 = vmatpush.msra.mxu0 %v2677_v3  ;;  %1477 = vmatpush.msra.mxu1 %v2682_v4  ;;  %v3517_v3 = vld [vmem:[%s3797_s8 + $0x38] sm:$0xff] }
 0x1c0   : > { %1415 = vmatpush.msra.mxu2 %v3482_v63  ;;  %1435 = vmatpush.msrb.mxu3 %v3487_v27 }
 0x1c1   : > { %1458 = vmatpush.msra.mxu0 %v2689_v5  ;;  %1478 = vmatpush.msra.mxu1 %v2694_v6 }
 0x1c2   : > { %1416 = vmatpush.msra.mxu2 %v3494_v56  ;;  %1436 = vmatpush.msrb.mxu3 %v3499_v14 }
 0x1c3   : > { %1459 = vmatpush.msra.mxu0 %v2699_v7  ;;  %1479 = vmatpush.msra.mxu1 %v2706_v8 }
 0x1c4   : > { %2165 = vmatmul.msk.f32.vlgmr.msrb.gmra.mxu2 %vm532_vm1, %v2668_v59  ;;  %2166 = vmatmul.msk.f32.vlgmr.msra.gmra.mxu3 %vm532_vm1, %v2668_v59 }
 0x1c5   : > { %2167 = vmatmul.msk.f32.vlgmr.msrb.gmra.mxu0 %vm532_vm1, %v2668_v59  ;;  %2168 = vmatmul.msk.f32.vlgmr.msrb.gmra.mxu1 %vm532_vm1, %v2668_v59 }
 0x1c6   : > { %1417 = vmatpush.msra.mxu2 %v3512_v61  ;;  %1437 = vmatpush.msrb.mxu3 %v3517_v3 }
 0x1c7   : > { %1460 = vmatpush.msra.mxu0 %v2711_v9  ;;  %1480 = vmatpush.msra.mxu1 %v2716_v10 }
 0x1c8   : > { %1497 = vmatpush.msrb.mxu2 %v2725_v11  ;;  %1517 = vmatpush.msra.mxu3 %v2730_v12 }
 0x1c9   : > { %1537 = vmatpush.msrb.mxu0 %v2793_v30  ;;  %1557 = vmatpush.msrb.mxu1 %v2798_v31 }
 0x1ca   : > { %1498 = vmatpush.msrb.mxu2 %v2735_v13  ;;  %1518 = vmatpush.msra.mxu3 %v2742_v15 }
 0x1cb   : > { %1538 = vmatpush.msrb.mxu0 %v2809_v33  ;;  %1558 = vmatpush.msrb.mxu1 %v2814_v34  ;;  %v3840_v34 = vld [vmem:[#allocation19_spill] sm:$0xff] }
 0x1cc   : > { %1499 = vmatpush.msrb.mxu2 %v2747_v16  ;;  %1519 = vmatpush.msra.mxu3 %v2752_v17 }
 0x1cd   : > { %2169 = vmatmul.msk.f32.vlgmr.msra.gmra.mxu2 %vm532_vm1, %v2668_v59  ;;  %2170 = vmatmul.msk.f32.vlgmr.msrb.gmra.mxu3 %vm532_vm1, %v2668_v59 }
 0x1ce   : > { %1500 = vmatpush.msrb.mxu2 %v2759_v18  ;;  %1520 = vmatpush.msra.mxu3 %v2764_v19 }
 0x1cf   : > { %1539 = vmatpush.msrb.mxu0 %v2821_v35  ;;  %1559 = vmatpush.msrb.mxu1 %v2826_v36  ;;  %v3841_v35 = vld [vmem:[#allocation20_spill] sm:$0xff]  ;;  %v2251_v36 = vld [vmem:[%s2550_s23] sm:$0xff]  ;;  %s1993_s23 = sshll.u32 %s3207_s22, 4  ;;  %s1994_s23 = int_to_ptr.vmem [resolvable:$true] %s1993_s23 }
 0x1d0   : > { %1577 = vmatpush.msra.mxu2 %v2845_v39  ;;  %1597 = vmatpush.msrb.mxu3 %v2850_v40 }
 0x1d1   : > { %1540 = vmatpush.msrb.mxu0 %v2833_v37  ;;  %1560 = vmatpush.msrb.mxu1 %v2838_v38  ;;  %v3842_v38 = vld [vmem:[#allocation12_spill] sm:$0xff] }
 0x1d2   : > { %1578 = vmatpush.msra.mxu2 %v2861_v41  ;;  %1598 = vmatpush.msrb.mxu3 %v2866_v42 }
 0x1d4   : > { %1579 = vmatpush.msra.mxu2 %v2873_v43  ;;  %1599 = vmatpush.msrb.mxu3 %v2878_v44 }
 0x1d6   : > { %1580 = vmatpush.msra.mxu2 %v2885_v45  ;;  %1600 = vmatpush.msrb.mxu3 %v2890_v46 }
 0x221   : > { %v1098_v4 = vpop.f32.mrf.mxu0  ;;  %v1118_v5 = vpop.f32.mrf.mxu1 }
 0x222   : > { %v1119_v7 = vadd.f32 %v1118_v5, %v1098_v4 }
 0x22f   : > { %v1138_v6 = vpop.f32.mrf.mxu2  ;;  %v1158_v9 = vpop.f32.mrf.mxu3 }
 0x230   : > { %v1139_v8 = vadd.f32 %v1138_v6, %v1119_v7 }
 0x231   : > { %v1178_v11 = vpop.f32.mrf.mxu0  ;;  %v1198_v13 = vpop.f32.mrf.mxu1 }
 0x232   : > { %v1159_v10 = vadd.f32 %v1158_v9, %v1139_v8 }
 0x234   : > { %v1179_v12 = vadd.f32 %v1178_v11, %v1159_v10 }
 0x236   : > { %v1199_v15 = vadd.f32 %v1198_v13, %v1179_v12 }
 0x23f   : > { %v1218_v16 = vpop.f32.mrf.mxu2  ;;  %v1238_v18 = vpop.f32.mrf.mxu3 }
 0x240   : > { %v1219_v17 = vadd.f32 %v1218_v16, %v1199_v15 }
 0x242   : > { %v1239_v19 = vadd.f32 %v1238_v18, %v1219_v17 }
 0x244   : > { %2171 = vmatmul.msk.f32.vlgmr.msra.gmra.mxu0 %vm532_vm1, %v1239_v19  ;;  %2172 = vmatmul.msk.f32.vlgmr.msra.gmra.mxu1 %vm532_vm1, %v1239_v19  ;;  %v1242_v30 = vmul.f32 %v1239_v19, %v2800_v32  ;;  %v731_v32 = vpop.xlane.xlu1 %730 }
 0x245   : > { %2173 = vmatmul.msk.f32.vlgmr.msrb.gmra.mxu2 %vm532_vm1, %v1239_v19  ;;  %2174 = vmatmul.msk.f32.vlgmr.msra.gmra.mxu3 %vm532_vm1, %v1239_v19  ;;  %v732_v33 = vmul.f32 %v731_v32, %v2668_v59 }
 0x246   : > { %v1243_v31 = vsel %vm532_vm1, %v1242_v30, 0.0  ;;  %1676 = vmatpush.msrb.mxu2 %v3354_v52  ;;  %1696 = vmatpush.msra.mxu3 %v3359_v53  ;;  %v2261_v52 = vld [vmem:[%s3798_s9 + $0x58] sm:$0xff]  ;;  %v2262_v53 = vld [vmem:[%s3798_s9 + $0x40] sm:$0xff] }
 0x247   : > { %1244 = vadd.xlane.f32.xlu0 %v1243_v31  ;;  %1636 = vmatpush.msra.mxu0 %v3300_v21  ;;  %v733_v37 = vadd.f32 %v2251_v36, %v732_v33  ;;  %v2252_v21 = vld [vmem:[%s3798_s9 + $0xd0] sm:$0xff] }
 0x248   : > { %1656 = vmatpush.msra.mxu1 %v3305_v22  ;;  %1677 = vmatpush.msrb.mxu2 %v3366_v54  ;;  %v2253_v22 = vld [vmem:[%s3798_s9 + $0xd8] sm:$0xff]  ;;  %v2263_v54 = vld [vmem:[%s3798_s9 + $0x48] sm:$0xff] }
 0x249   : > { %1697 = vmatpush.msra.mxu3 %v3371_v55  ;;  %1637 = vmatpush.msra.mxu0 %v3310_v23  ;;  %v734_v43 = vadd.f32 %v733_v37, %v3842_v38  ;;  %v2254_v23 = vld [vmem:[%s3798_s9 + $0xc0] sm:$0xff]  ;;  %v2264_v55 = vld [vmem:[%s3798_s9 + $0x10] sm:$0xff] }
 0x24a   : > { %1657 = vmatpush.msra.mxu1 %v3315_v24  ;;  %1678 = vmatpush.msrb.mxu2 %v3378_v57  ;;  %v2255_v24 = vld [vmem:[%s3798_s9 + $0xc8] sm:$0xff]  ;;  %v2265_v57 = vld [vmem:[%s3798_s9 + $0x18] sm:$0xff] }
 0x24b   : > { %1698 = vmatpush.msra.mxu3 %v3383_v58  ;;  %1638 = vmatpush.msra.mxu0 %v3322_v25  ;;  %v2256_v25 = vld [vmem:[%s3798_s9 + $0x90] sm:$0xff]  ;;  %v2266_v58 = vld [vmem:[%s3798_s9] sm:$0xff] }
 0x24c   : > { %2175 = vmatmul.msk.f32.vlgmr.msrb.gmra.mxu0 %vm532_vm1, %v1239_v19  ;;  %2176 = vmatmul.msk.f32.vlgmr.msrb.gmra.mxu1 %vm532_vm1, %v1239_v19 }
 0x24d   : > { %2177 = vmatmul.msk.f32.vlgmr.msra.gmra.mxu2 %vm532_vm1, %v1239_v19  ;;  %2178 = vmatmul.msk.f32.vlgmr.msrb.gmra.mxu3 %vm532_vm1, %v1239_v19 }
 0x24e   : > { %1658 = vmatpush.msra.mxu1 %v3327_v26  ;;  %1679 = vmatpush.msrb.mxu2 %v3396_v62  ;;  %v2257_v26 = vld [vmem:[%s3798_s9 + $0x98] sm:$0xff]  ;;  %v2269_v62 = vld [vmem:[%s3798_s9 + $0xe8] sm:$0xff] }
 0x24f   : > { %1699 = vmatpush.msra.mxu3 %v3401_v0  ;;  %1639 = vmatpush.msra.mxu0 %v3340_v29  ;;  %v2259_v29 = vld [vmem:[%s3798_s9 + $0x88] sm:$0xff] }
 0x250   : > { %1659 = vmatpush.msra.mxu1 %v3345_v47  ;;  %1756 = vmatpush.msra.mxu2 %v3468_v1  ;;  %v2260_v47 = vld [vmem:[%s3798_s9 + $0x50] sm:$0xff]  ;;  %v2277_v1 = vld [vmem:[%s3798_s9 + $0x38] sm:$0xff] }
 0x251   : > { %1776 = vmatpush.msrb.mxu3 %v3473_v51  ;;  %1716 = vmatpush.msrb.mxu0 %v3410_v49  ;;  %v2274_v49 = vld [vmem:[%s3798_s9 + $0x60] sm:$0xff]  ;;  %v2276_v51 = vld [vmem:[%s3798_s9 + $0x30] sm:$0xff] }
 0x252   : > { %1736 = vmatpush.msrb.mxu1 %v3415_v50  ;;  %1757 = vmatpush.msra.mxu2 %v3482_v63  ;;  %v2275_v50 = vld [vmem:[%s3798_s9 + $0x68] sm:$0xff] }
 0x253   : > { %1777 = vmatpush.msrb.mxu3 %v3487_v27  ;;  %1717 = vmatpush.msrb.mxu0 %v3840_v34 }
 0x254   : > { %1737 = vmatpush.msrb.mxu1 %v3841_v35  ;;  %1758 = vmatpush.msra.mxu2 %v3494_v56 }
 0x255   : > { %1778 = vmatpush.msrb.mxu3 %v3499_v14  ;;  %1718 = vmatpush.msrb.mxu0 %v3434_v2  ;;  %v2278_v2 = vld [vmem:[%s3798_s9 + $0x20] sm:$0xff] }
 0x256   : > { %1738 = vmatpush.msrb.mxu1 %v3439_v20  ;;  %1759 = vmatpush.msra.mxu2 %v3512_v61  ;;  %v2268_v61 = vld [vmem:[%s3798_s9 + $0xe0] sm:$0xff]  ;;  %v2279_v20 = vld [vmem:[%s3798_s9 + $0x28] sm:$0xff] }
 0x257   : > { %1779 = vmatpush.msrb.mxu3 %v3517_v3  ;;  %1719 = vmatpush.msrb.mxu0 %v3452_v60  ;;  %v2267_v60 = vld [vmem:[%s3798_s9 + $0x8] sm:$0xff] }
 0x258   : > { %1739 = vmatpush.msrb.mxu1 %v3457_v28  ;;  %v2258_v28 = vld [vmem:[%s3798_s9 + $0x80] sm:$0xff] }
 0x25b   : > { %1962 = vrot.lane.b32.xlu0 %v734_v43, %s3843_s27  ;;  %s1991_s27 = scalar_lea.hbm %s3801_s12, %s2197_s15 }
 0x25c   : > { %s1995_s20 = sshll.u32 %s1991_s27, 4  ;;  %s1996_s20 = int_to_ptr.hbm [resolvable:$true] %s1995_s20 }
 0x25d   : > { %s2294_s18 = sshra.s32 %s1996_s20, 4  ;;  %s2295_s18 = int_to_ptr.hbm [resolvable:$true] %s2294_s18 }
 0x25e   : > { %s2296_s6 = scalar_lea.hbm %s2295_s18, 8  ;;  %p2301_p0 = scmp.lt.s32.totalorder %s2295_s18, %s3801_s12 }
 0x25f   : > { %p2297_p11 = scmp.ne.s32.totalorder %s2295_s18, %s2296_s6  ;;  %p2302_p1 = scmp.lt.s32.totalorder %s2300_s30, %s2296_s6 }
 0x261   : > { %p2298_p12 = pnand %p2297_p11, %p2487_p5  ;;  %p2303_p2 = por %p2302_p1, %p2301_p0 }
 0x263   : > { %p2299_p13 = pneg %p2298_p12 }
 0x265   : > { %p2304_p3 = pnand %p2303_p2, %p2299_p13 }
 0x2ba   : > { %v1245_v44 = vpop.xlane.xlu0 %1244 }
 0x2bb   : > { %v1246_v45 = vmul.f32 %v1245_v44, %v2668_v59 }
 0x2bd   : > { %v1247_v46 = vadd.f32 %v1246_v45, %v1239_v19 }
 0x2bf   : > { %2179 = vmatmul.msk.f32.vlgmr.msra.gmra.mxu0 %vm532_vm1, %v1247_v46  ;;  %2180 = vmatmul.msk.f32.vlgmr.msra.gmra.mxu1 %vm532_vm1, %v1247_v46 }
 0x2c0   : > { %2181 = vmatmul.msk.f32.vlgmr.msrb.gmra.mxu2 %vm532_vm1, %v1247_v46  ;;  %2182 = vmatmul.msk.f32.vlgmr.msra.gmra.mxu3 %vm532_vm1, %v1247_v46 }
 0x2c1   : > { %1836 = vmatpush.msrb.mxu2 %v2252_v21  ;;  %1856 = vmatpush.msra.mxu3 %v2253_v22 }
 0x2c2   : > { %1796 = vmatpush.msra.mxu0 %v2254_v23  ;;  %1816 = vmatpush.msra.mxu1 %v2255_v24 }
 0x2c3   : > { %1837 = vmatpush.msrb.mxu2 %v2256_v25  ;;  %1857 = vmatpush.msra.mxu3 %v2257_v26 }
 0x2c4   : > { %1797 = vmatpush.msra.mxu0 %v2258_v28  ;;  %1817 = vmatpush.msra.mxu1 %v2259_v29 }
 0x2c5   : > { %1838 = vmatpush.msrb.mxu2 %v2260_v47  ;;  %1858 = vmatpush.msra.mxu3 %v2261_v52 }
 0x2c6   : > { %1798 = vmatpush.msra.mxu0 %v2262_v53  ;;  %1818 = vmatpush.msra.mxu1 %v2263_v54 }
 0x2c7   : > { %2183 = vmatmul.msk.f32.vlgmr.msrb.gmra.mxu0 %vm532_vm1, %v1247_v46  ;;  %2184 = vmatmul.msk.f32.vlgmr.msrb.gmra.mxu1 %vm532_vm1, %v1247_v46 }
 0x2c8   : > { %2185 = vmatmul.msk.f32.vlgmr.msra.gmra.mxu2 %vm532_vm1, %v1247_v46  ;;  %2186 = vmatmul.msk.f32.vlgmr.msrb.gmra.mxu3 %vm532_vm1, %v1247_v46 }
 0x2c9   : > { %1839 = vmatpush.msrb.mxu2 %v2264_v55  ;;  %1859 = vmatpush.msra.mxu3 %v2265_v57 }
 0x2ca   : > { %1799 = vmatpush.msra.mxu0 %v2266_v58  ;;  %1819 = vmatpush.msra.mxu1 %v2267_v60 }
 0x2cb   : > { %1916 = vmatpush.msra.mxu2 %v2845_v39  ;;  %1936 = vmatpush.msrb.mxu3 %v2850_v40  ;;  %v2270_v39 = vld [vmem:[%s3798_s9 + $0xa0] sm:$0xff]  ;;  %v2271_v40 = vld [vmem:[%s3798_s9 + $0xa8] sm:$0xff] }
 0x2cc   : > { %1876 = vmatpush.msrb.mxu0 %v2268_v61  ;;  %1896 = vmatpush.msrb.mxu1 %v2269_v62 }
 0x2cd   : > { %v1963_v0 = vpop.permute.xlu0 %1962  ;;  %1917 = vmatpush.msra.mxu2 %v2861_v41  ;;  %1937 = vmatpush.msrb.mxu3 %v2866_v42  ;;  %v2272_v41 = vld [vmem:[%s3798_s9 + $0x70] sm:$0xff]  ;;  %v2273_v42 = vld [vmem:[%s3798_s9 + $0x78] sm:$0xff] }
 0x2ce   : > { %1877 = vmatpush.msrb.mxu0 %v2270_v39  ;;  %1897 = vmatpush.msrb.mxu1 %v2271_v40  ;;  %1966 = vst.msk [vmem:[%s3207_s22] sm:$0xff] %vm1965_vm2, %v1963_v0 }
 0x2cf   : > { %2187 = vmatmul.msk.f32.vlgmr.msra.gmra.mxu0 %vm532_vm1, %v2668_v59  ;;  %2188 = vmatmul.msk.f32.vlgmr.msra.gmra.mxu1 %vm532_vm1, %v2668_v59 }
 0x2d0   : > { %2189 = vmatmul.msk.f32.vlgmr.msrb.gmra.mxu2 %vm532_vm1, %v2668_v59  ;;  %2190 = vmatmul.msk.f32.vlgmr.msra.gmra.mxu3 %vm532_vm1, %v2668_v59 }
 0x2d1   : > { %1918 = vmatpush.msra.mxu2 %v2272_v41  ;;  %1938 = vmatpush.msrb.mxu3 %v2273_v42 }
 0x2d2   : > { %1878 = vmatpush.msrb.mxu0 %v2274_v49  ;;  %1898 = vmatpush.msrb.mxu1 %v2275_v50 }
 0x2d3   : > { %1919 = vmatpush.msra.mxu2 %v2276_v51  ;;  %1939 = vmatpush.msrb.mxu3 %v2277_v1 }
 0x2d4   : > { %1879 = vmatpush.msrb.mxu0 %v2278_v2  ;;  %1899 = vmatpush.msrb.mxu1 %v2279_v20 }
 0x2d7   : > { %2191 = vmatmul.msk.f32.vlgmr.msrb.gmra.mxu0 %vm532_vm1, %v2668_v59  ;;  %2192 = vmatmul.msk.f32.vlgmr.msrb.gmra.mxu1 %vm532_vm1, %v2668_v59 }
 0x2d8   : > { %2193 = vmatmul.msk.f32.vlgmr.msra.gmra.mxu2 %vm532_vm1, %v2668_v59  ;;  %2194 = vmatmul.msk.f32.vlgmr.msrb.gmra.mxu3 %vm532_vm1, %v2668_v59 }
 0x2d9   : > { %2307 = shalt.err (!%p2304_p3)
}
 0x2da   : > { %2204 = dma.vmem_to_hbm [thread:$0]  (%p2487_p5), %s1994_s23, 128, %s1996_s20, %s1976_s29   ;;  %v1299_v59 = vpop.f32.mrf.mxu0  ;;  %v1319_v63 = vpop.f32.mrf.mxu1  ;;  %v3844_v37 = vld [vmem:[#allocation13_spill] sm:$0xff]  ;;  %v3845_v43 = vld [vmem:[#allocation14_spill] sm:$0xff]  ;;  %v3846_v47 = vld [vmem:[#allocation15_spill] sm:$0xff] }
 0x2db   : > { %v1339_v27 = vpop.f32.mrf.mxu2  ;;  %v1359_v56 = vpop.f32.mrf.mxu3  ;;  %s2144_s0 = sshll.u32 %s3148_s24, 6  ;;  %v3847_v53 = vld [vmem:[#allocation16_spill] sm:$0xff]  ;;  %v3848_v61 = vld [vmem:[#allocation17_spill] sm:$0xff]  ;;  %v3849_v0 = vld [vmem:[#allocation18_spill] sm:$0xff]  ;;  %s2203_s22 = sshll.u32 %s2470_s11, 6 }
 0x2dc   : > { %s3740_s1 = scalar_lea.vmem [#allocation4], %s2144_s0  ;;  %s2006_s19 = scalar_lea.hbm %s3802_s13, %s2203_s22 }
 0x2dd   : > { %s2008_s11 = sshll.u32 %s3740_s1, 4  ;;  %s2010_s27 = sshll.u32 %s2006_s19, 4  ;;  %s2009_s11 = int_to_ptr.vmem [resolvable:$true] %s2008_s11  ;;  %s2011_s27 = int_to_ptr.hbm [resolvable:$true] %s2010_s27 }
 0x2de   : > { %s1981_s23 = scalar_lea.sflag [#allocation5], %s3148_s24  ;;  %s2322_s20 = sshra.s32 %s2011_s27, 4  ;;  %s2323_s20 = int_to_ptr.hbm [resolvable:$true] %s2322_s20 }
 0x2df   : > { %s2324_s29 = scalar_lea.hbm %s2323_s20, 64  ;;  %s2328_s14 = scalar_lea.hbm %s3802_s13, 128 }
 0x2e0   : > { %p2325_p4 = scmp.ne.s32.totalorder %s2323_s20, %s2324_s29  ;;  %p2329_p9 = scmp.lt.s32.totalorder %s2323_s20, %s3802_s13 }
 0x2e1   : > { %p2330_p10 = scmp.lt.s32.totalorder %s2328_s14, %s2324_s29 }
 0x2e2   : > { %v1379_v14 = vpop.f32.mrf.mxu0  ;;  %v1399_v3 = vpop.f32.mrf.mxu1  ;;  %p2326_p7 = pnand %p2325_p4, %p2487_p5 }
 0x2e3   : > { %v1419_v4 = vpop.f32.mrf.mxu2  ;;  %v1439_v5 = vpop.f32.mrf.mxu3  ;;  %p2331_p11 = por %p2330_p10, %p2329_p9 }
 0x2e4   : > { %p2327_p8 = pneg %p2326_p7 }
 0x2e6   : > { %p2332_p12 = pnand %p2331_p11, %p2327_p8 }
 0x2ea   : > { %v1462_v6 = vpop.f32.mrf.mxu0  ;;  %v1482_v7 = vpop.f32.mrf.mxu1 }
 0x2eb   : > { %v1502_v8 = vpop.f32.mrf.mxu2  ;;  %v1522_v9 = vpop.f32.mrf.mxu3  ;;  %v1605_v31 = vmul.f32 %v1462_v6, %v1299_v59  ;;  %v1606_v32 = vmul.f32 %v1482_v7, %v1319_v63 }
 0x2ec   : > { %v1607_v23 = vmul.f32 %v1502_v8, %v1339_v27  ;;  %v1608_v24 = vmul.f32 %v1522_v9, %v1359_v56  ;;  %v3850_v27 = vld [vmem:[#allocation21_spill] sm:$0xff] }
 0x2ed   : > { %v1613_v38 = vadd.f32 %v1605_v31, %v3844_v37  ;;  %v1614_v44 = vadd.f32 %v1606_v32, %v3845_v43 }
 0x2ee   : > { %v1615_v52 = vadd.f32 %v1607_v23, %v3846_v47  ;;  %v1616_v54 = vadd.f32 %v1608_v24, %v3847_v53 }
 0x2f2   : > { %v1542_v10 = vpop.f32.mrf.mxu0  ;;  %v1562_v11 = vpop.f32.mrf.mxu1 }
 0x2f3   : > { %v1582_v12 = vpop.f32.mrf.mxu2  ;;  %v1602_v13 = vpop.f32.mrf.mxu3  ;;  %v1609_v25 = vmul.f32 %v1542_v10, %v1379_v14  ;;  %v1610_v26 = vmul.f32 %v1562_v11, %v1399_v3 }
 0x2f4   : > { %v1611_v1 = vmul.f32 %v1582_v12, %v1419_v4  ;;  %v1612_v2 = vmul.f32 %v1602_v13, %v1439_v5 }
 0x2f5   : > { %v1617_v62 = vadd.f32 %v1609_v25, %v3848_v61  ;;  %v1618_v39 = vadd.f32 %v1610_v26, %v3849_v0 }
 0x2f6   : > { %v1619_v63 = vadd.f32 %v1611_v1, %v3442_v48  ;;  %v1620_v56 = vadd.f32 %v1612_v2, %v3850_v27 }
 0x33c   : > { %v1641_v15 = vpop.f32.mrf.mxu0  ;;  %v1661_v16 = vpop.f32.mrf.mxu1 }
 0x343   : > { %v1681_v17 = vpop.f32.mrf.mxu2  ;;  %v1701_v18 = vpop.f32.mrf.mxu3 }
 0x344   : > { %v1721_v19 = vpop.f32.mrf.mxu0  ;;  %v1741_v30 = vpop.f32.mrf.mxu1 }
 0x34b   : > { %v1761_v33 = vpop.f32.mrf.mxu2  ;;  %v1781_v34 = vpop.f32.mrf.mxu3 }
 0x34c   : > { %v1801_v35 = vpop.f32.mrf.mxu0  ;;  %v1821_v36 = vpop.f32.mrf.mxu1 }
 0x34d   : > { %v1944_v45 = vmul.f32 %v1801_v35, %v1641_v15  ;;  %v1945_v46 = vmul.f32 %v1821_v36, %v1661_v16 }
 0x34f   : > { %v1952_v21 = vadd.f32 %v1944_v45, %v1613_v38  ;;  %v1953_v22 = vadd.f32 %v1945_v46, %v1614_v44 }
 0x351   : > { %1967 = vst [vmem:[%s3740_s1] sm:$0xff] %v1952_v21 }
 0x352   : > { %1968 = vst [vmem:[%s3740_s1 + $0x8] sm:$0xff] %v1953_v22 }
 0x353   : > { %v1841_v28 = vpop.f32.mrf.mxu2  ;;  %v1861_v29 = vpop.f32.mrf.mxu3 }
 0x354   : > { %v1946_v55 = vmul.f32 %v1841_v28, %v1681_v17  ;;  %v1947_v57 = vmul.f32 %v1861_v29, %v1701_v18  ;;  %v1881_v58 = vpop.f32.mrf.mxu0  ;;  %v1901_v60 = vpop.f32.mrf.mxu1 }
 0x355   : > { %v1948_v40 = vmul.f32 %v1881_v58, %v1721_v19  ;;  %v1949_v41 = vmul.f32 %v1901_v60, %v1741_v30 }
 0x356   : > { %v1954_v42 = vadd.f32 %v1946_v55, %v1615_v52  ;;  %v1955_v49 = vadd.f32 %v1947_v57, %v1616_v54 }
 0x357   : > { %v1956_v50 = vadd.f32 %v1948_v40, %v1617_v62  ;;  %v1957_v51 = vadd.f32 %v1949_v41, %v1618_v39 }
 0x358   : > { %1969 = vst [vmem:[%s3740_s1 + $0x10] sm:$0xff] %v1954_v42 }
 0x359   : > { %1970 = vst [vmem:[%s3740_s1 + $0x18] sm:$0xff] %v1955_v49 }
 0x35a   : > { %1971 = vst [vmem:[%s3740_s1 + $0x20] sm:$0xff] %v1956_v50 }
 0x35b   : > { %1972 = vst [vmem:[%s3740_s1 + $0x28] sm:$0xff] %v1957_v51  ;;  %v1921_v20 = vpop.f32.mrf.mxu2  ;;  %v1941_v59 = vpop.f32.mrf.mxu3 }
 0x35c   : > { %v1950_v14 = vmul.f32 %v1921_v20, %v1761_v33  ;;  %v1951_v3 = vmul.f32 %v1941_v59, %v1781_v34 }
 0x35e   : > { %v1958_v4 = vadd.f32 %v1950_v14, %v1619_v63  ;;  %v1959_v5 = vadd.f32 %v1951_v3, %v1620_v56 }
 0x360   : > { %1973 = vst [vmem:[%s3740_s1 + $0x30] sm:$0xff] %v1958_v4 }
 0x361   : > { %1974 = vst [vmem:[%s3740_s1 + $0x38] sm:$0xff] %v1959_v5 }
 0x362   : > { %2335 = shalt.err (!%p2332_p12)
}
 0x363   : > { %2205 = dma.vmem_to_hbm [thread:$0]  (%p2487_p5), %s2009_s11, 1024, %s2011_s27, %s1981_s23  }
 0x364 PF: > { %p2215_p13 = scmp.ge.s32.totalorder %s2374_s28, 2  ;;  %s2022_s0 = sand.u32 1, %s2362_s25  }
 0x365   : > { %s2023_s1 = scalar_lea.sflag [#allocation3], %s2022_s0 }
 0x366   : > { %p2209_p0 = pnand %p2215_p13, %p2491_p6 }
 0x368   : > { %p2210_p1 = pneg %p2209_p0 }
 0x36a   : > { %2353 = dma.done.wait (%p2210_p1), %s2023_s1, 128  }
 0x36b   : > { %2355 = vsyncadd (%p2210_p1), %s2023_s1, 4294967168  ;;  %s2033_s22 = scalar_lea.sflag [#allocation5], %s2022_s0 }
 0x36c   : > { %2357 = dma.done.wait (%p2210_p1), %s2033_s22, 1024  }
 0x36d   : > { %2359 = vsyncadd (%p2210_p1), %s2033_s22, 4294966272  ;;  %s3852_s28 = sld [smem:[#allocation9_spill]]  ;;  %s3855_s25 = smov %s2366_s26 }
 0x36e   : > { %s3853_s15 = sld [smem:[#allocation8_spill]] }
 0x36f   : > { %s3854_s27 = sld [smem:[#allocation10_spill]] }
 0x373   : > { %p27_p5 = scmp.ge.s32.totalorder %s3852_s28, 4  }
 0x374   : > { %s3856_s26 = smov %s3853_s15 }
 0x375   :  { %29 = sbr.rel (!%p27_p5) target bundleno = 9 (0x9), region = 129 }
 0x37a   :  { %2039 = vsyncpa [#allocation3], 1 }
 0x37b   :  { %2041 = vsyncpa [#allocation3 + $0x1], 1 }
 0x37c   :  { %2042 = vsyncpa [#allocation5], 1 }
 0x37d   :  { %2044 = vsyncpa [#allocation5 + $0x1], 1 }

</bundles_post_ra>
